<compile_context>
chip_gen: v7x
topology: tpu7x:2x2x1
jax: 0.10.0
libtpu: 0.0.40
codegen_flags: <defaults>
</compile_context>

<pallas_src>
import jax
import jax.numpy as jnp
from jax.experimental import pallas as pl
from jax.experimental.pallas import tpu as pltpu
import numpy as np


# ----------------------------------------------------------------------------
# Fused Pallas kernel: embedding-row gather + LSTM recurrence + h2z linear
# ----------------------------------------------------------------------------
def vae_encoder_kernel(tok_ref, xproj_ref, whh_ref, wz_ref, bz_ref,
                       out_ref, mu_ref, logvar_ref, xg_ref):
    """tok_ref: (s_len*batch,) int32 in SMEM (scalar prefetch).

    xproj_ref: (vocab, 4H) = embedding @ W_ih^T + b_ih + b_hh, gate-scaled.
    whh_ref:   (H, 4H) gate-scaled W_hh^T.
    out_ref:   (s_len, batch, H) memory bank (final layout, no wrapper reshape).
    mu_ref / logvar_ref: (batch, Z).
    xg_ref:    VMEM scratch (s_len*batch, 4H).
    """
    H = whh_ref.shape[0]
    s_len, batch, _ = out_ref.shape
    z_size = mu_ref.shape[1]

    # Fused embedding gather + input projection: row for token v already holds
    # emb[v] @ W_ih^T + bias (gate-scaled).  One dynamic-sublane load + static
    # store per token, all independent of the recurrent chain.
    for r in range(s_len * batch):
        xg_ref[pl.ds(r, 1), :] = xproj_ref[pl.ds(tok_ref[r], 1), :]

    whh = whh_ref[...]                                  # (H, 4H), vreg-resident

    # Lane mask selecting the g-gate columns [2H, 3H).
    lane = jax.lax.broadcasted_iota(jnp.int32, (batch, 4 * H), 1)
    g_mask = jnp.logical_and(lane >= 2 * H, lane < 3 * H)

    h = jnp.zeros((batch, H), jnp.float32)
    c = jnp.zeros((batch, H), jnp.float32)

    # Trace-time unrolled recurrence (s_len tiny & static); h/c stay in vregs,
    # all slice offsets static.
    for t in range(s_len):
        gates = xg_ref[pl.ds(t * batch, batch), :] + jnp.dot(
            h, whh, preferred_element_type=jnp.float32)       # (batch, 4H)
        # Single EUP pass for all four gates: i/f/o columns were pre-scaled by
        # 0.5 on the host, so sigmoid(x) == 0.5 * tanh(x/2) + 0.5.
        th = jnp.tanh(gates)
        act = jnp.where(g_mask, th, 0.5 * th + 0.5)
        i = act[:, 0 * H:1 * H]
        f = act[:, 1 * H:2 * H]
        g = act[:, 2 * H:3 * H]
        o = act[:, 3 * H:4 * H]
        c = f * c + i * g
        h = o * jnp.tanh(c)
        out_ref[t, :, :] = h              # tile-aligned (batch, H) store

    # Fused h2z on the final hidden state (mean over the size-1 layer axis is a
    # no-op): ps = hhh @ W_z^T + b_z, emitted as two outputs (mu, logvar).
    ps = (jnp.dot(h, wz_ref[...], preferred_element_type=jnp.float32)
          + bz_ref[...])
    mu_ref[...] = ps[:, :z_size]
    logvar_ref[...] = ps[:, z_size:]


# ----------------------------------------------------------------------------
# One-time parameter preparation (hoisted out of the jitted forward)
# ----------------------------------------------------------------------------
def prepare_params(params):
    """Pre-transpose weights, fold biases, apply the 0.5 gate scaling, and
    pre-compose the embedding with the input projection.  Run once per model."""
    H = params["w_hh"].shape[1]
    two_z = params["w_z"].shape[0]

    # PyTorch LSTM gate layout along the 4H axis: [i | f | g | o].
    # Scale i/f/o by 0.5 so a single tanh reconstructs all gate activations.
    scale = jnp.concatenate([
        jnp.full((H,), 0.5, jnp.float32),   # i
        jnp.full((H,), 0.5, jnp.float32),   # f
        jnp.ones((H,), jnp.float32),        # g
        jnp.full((H,), 0.5, jnp.float32),   # o
    ])

    wih_t = params["w_ih"].T.astype(jnp.float32) * scale[None, :]     # (E, 4H)
    b = ((params["b_ih"] + params["b_hh"]).astype(jnp.float32)
         * scale)[None, :]                                            # (1, 4H)
    # Gather-then-project == project-then-gather: precompute per-token rows.
    xproj = params["embedding"].astype(jnp.float32) @ wih_t + b       # (V, 4H)
    whh_t = params["w_hh"].T.astype(jnp.float32) * scale[None, :]     # (H, 4H)
    wz_t = params["w_z"].T.astype(jnp.float32)                        # (H, 2Z)
    bz = params["b_z"].reshape(1, two_z).astype(jnp.float32)          # (1, 2Z)

    return {"xproj": xproj, "whh_t": whh_t, "wz_t": wz_t, "bz": bz}


# ----------------------------------------------------------------------------
# Wrapper
# ----------------------------------------------------------------------------
def vae_encoder_forward(prepped, input_tokens):
    """Mirrors VaeEncoder.forward(input, lengths=None, hidden=None)."""
    s_len, batch, _ = input_tokens.shape
    xproj = prepped["xproj"]
    whh_t = prepped["whh_t"]
    wz_t = prepped["wz_t"]
    bz = prepped["bz"]
    H = whh_t.shape[0]
    two_z = wz_t.shape[1]
    z_size = two_z // 2

    tok = input_tokens[..., 0].reshape(s_len * batch).astype(jnp.int32)

    outputs, mu, logvar = pl.pallas_call(
        vae_encoder_kernel,
        out_shape=(
            jax.ShapeDtypeStruct((s_len, batch, H), jnp.float32),
            jax.ShapeDtypeStruct((batch, z_size), jnp.float32),
            jax.ShapeDtypeStruct((batch, z_size), jnp.float32),
        ),
        grid_spec=pltpu.PrefetchScalarGridSpec(
            num_scalar_prefetch=1,
            grid=(1,),
            in_specs=[
                pl.BlockSpec(xproj.shape, lambda i, tok: (0, 0)),
                pl.BlockSpec(whh_t.shape, lambda i, tok: (0, 0)),
                pl.BlockSpec(wz_t.shape, lambda i, tok: (0, 0)),
                pl.BlockSpec(bz.shape, lambda i, tok: (0, 0)),
            ],
            out_specs=(
                pl.BlockSpec((s_len, batch, H), lambda i, tok: (0, 0, 0)),
                pl.BlockSpec((batch, z_size), lambda i, tok: (0, 0)),
                pl.BlockSpec((batch, z_size), lambda i, tok: (0, 0)),
            ),
            scratch_shapes=[pltpu.VMEM((s_len * batch, 4 * H), jnp.float32)],
        ),
        compiler_params=pltpu.CompilerParams(
            dimension_semantics=("arbitrary",)),
    )(tok, xproj, whh_t, wz_t, bz)

    # sample(): z = mu + eps * exp(logvar/2) * varcoeff with varcoeff == 0.0
    # -> z == mu exactly; skip eps/std to avoid inf * 0 -> NaN.
    z = mu
    return outputs, z, mu, logvar


# ----------------------------------------------------------------------------
# Pure-JAX reference (for correctness check)
# ----------------------------------------------------------------------------
def lstm_ref(emb, w_ih, w_hh, b_ih, b_hh):
    batch = emb.shape[1]
    H = w_hh.shape[1]

    def step(carry, x):
        h, c = carry
        gates = x @ w_ih.T + h @ w_hh.T + b_ih + b_hh
        i, f, g, o = jnp.split(gates, 4, axis=1)
        i = jax.nn.sigmoid(i)
        f = jax.nn.sigmoid(f)
        g = jnp.tanh(g)
        o = jax.nn.sigmoid(o)
        c = f * c + i * g
        h = o * jnp.tanh(c)
        return (h, c), h

    init = (jnp.zeros((batch, H), jnp.float32), jnp.zeros((batch, H), jnp.float32))
    (h, _), ys = jax.lax.scan(step, init, emb)
    return ys, h


# ----------------------------------------------------------------------------
# Main
# ----------------------------------------------------------------------------
if __name__ == "__main__":
    # Small, module-consistent shapes
    s_len, batch = 8, 2
    vocab, emb_dim = 50, 16
    hidden_size = 32          # bidirectional=False -> per-direction H = 32
    z_size = 8
    H = hidden_size

    key = jax.random.PRNGKey(0)
    keys = jax.random.split(key, 8)

    params = {
        "embedding": 0.1 * jax.random.normal(keys[0], (vocab, emb_dim), jnp.float32),
        "w_ih": 0.1 * jax.random.normal(keys[1], (4 * H, emb_dim), jnp.float32),
        "w_hh": 0.1 * jax.random.normal(keys[2], (4 * H, H), jnp.float32),
        "b_ih": 0.1 * jax.random.normal(keys[3], (4 * H,), jnp.float32),
        "b_hh": 0.1 * jax.random.normal(keys[4], (4 * H,), jnp.float32),
        "w_z": 0.1 * jax.random.normal(keys[5], (2 * z_size, H), jnp.float32),
        "b_z": 0.1 * jax.random.normal(keys[6], (2 * z_size,), jnp.float32),
    }

    # input (LongTensor): len x batch x nfeat (nfeat = 1)
    input_tokens = jax.random.randint(keys[7], (s_len, batch, 1), 0, vocab,
                                      dtype=jnp.int32)

    prepped = prepare_params(params)          # one-time prep, outside the jit
    fwd = jax.jit(vae_encoder_forward)
    outputs, z, mu, logvar = fwd(prepped, input_tokens)
    jax.block_until_ready((outputs, z, mu, logvar))

    # Correctness check against a pure-JAX reference
    emb = params["embedding"][input_tokens[..., 0]]
    out_ref, h_ref = lstm_ref(emb, params["w_ih"], params["w_hh"],
                              params["b_ih"], params["b_hh"])
    hhh_ref = jnp.mean(h_ref[None], axis=0)
    ps_ref = hhh_ref @ params["w_z"].T + params["b_z"]
    mu_ref, logvar_ref = jnp.split(ps_ref, 2, axis=1)
    z_ref = mu_ref  # varcoeff == 0.0

    np.testing.assert_allclose(np.asarray(outputs), np.asarray(out_ref),
                               rtol=1e-5, atol=1e-5)
    np.testing.assert_allclose(np.asarray(mu), np.asarray(mu_ref),
                               rtol=1e-5, atol=1e-5)
    np.testing.assert_allclose(np.asarray(logvar), np.asarray(logvar_ref),
                               rtol=1e-5, atol=1e-5)
    np.testing.assert_allclose(np.asarray(z), np.asarray(z_ref),
                               rtol=1e-5, atol=1e-5)

    assert outputs.shape == (s_len, batch, hidden_size)
    assert z.shape == (batch, z_size) and mu.shape == (batch, z_size)
    assert logvar.shape == (batch, z_size)

    print("KERNEL_OK")
</pallas_src>

<mosaic_0001>
module attributes {stable_mosaic.version = 11 : i64} {
  func.func @vae_encoder_kernel(%arg0: i32, %arg1: memref<16xi32, #tpu.memory_space<smem>>, %arg2: memref<50x128xf32, #tpu.memory_space<vmem>>, %arg3: memref<32x128xf32, #tpu.memory_space<vmem>>, %arg4: memref<32x16xf32, #tpu.memory_space<vmem>>, %arg5: memref<1x16xf32, #tpu.memory_space<vmem>>, %arg6: memref<8x2x32xf32, #tpu.memory_space<vmem>>, %arg7: memref<2x8xf32, #tpu.memory_space<vmem>>, %arg8: memref<2x8xf32, #tpu.memory_space<vmem>>, %arg9: memref<16x128xf32, #tpu.memory_space<vmem>>) attributes {dimension_semantics = [#tpu.dimension_semantics<arbitrary>], iteration_bounds = array<i64: 1>, scalar_prefetch = 1 : i64, scratch_operands = 1 : i64, tpu.core_type = #tpu.core_type<tc>, window_params = [{pipeline_mode = #tpu.pipeline_mode<synchronous>, transform_indices = @transform_0, window_bounds = array<i64: 50, 128>}, {pipeline_mode = #tpu.pipeline_mode<synchronous>, transform_indices = @transform_1, window_bounds = array<i64: 32, 128>}, {pipeline_mode = #tpu.pipeline_mode<synchronous>, transform_indices = @transform_2, window_bounds = array<i64: 32, 16>}, {pipeline_mode = #tpu.pipeline_mode<synchronous>, transform_indices = @transform_3, window_bounds = array<i64: 1, 16>}, {pipeline_mode = #tpu.pipeline_mode<synchronous>, transform_indices = @transform_4, window_bounds = array<i64: 8, 2, 32>}, {pipeline_mode = #tpu.pipeline_mode<synchronous>, transform_indices = @transform_5, window_bounds = array<i64: 2, 8>}, {pipeline_mode = #tpu.pipeline_mode<synchronous>, transform_indices = @transform_6, window_bounds = array<i64: 2, 8>}]} {
    %c0 = arith.constant 0 : index
    %0 = memref.load %arg1[%c0] : memref<16xi32, #tpu.memory_space<smem>>
    %1 = arith.index_cast %0 : i32 to index
    %c0_0 = arith.constant 0 : index
    %2 = vector.load %arg2[%1, %c0_0] : memref<50x128xf32, #tpu.memory_space<vmem>>, vector<1x128xf32>
    %c0_1 = arith.constant 0 : index
    %c0_2 = arith.constant 0 : index
    %3 = vector.load %arg9[%c0_1, %c0_2] : memref<16x128xf32, #tpu.memory_space<vmem>>, vector<1x128xf32>
    tpu.vector_store %arg9[%c0_1, %c0_2], %2 {strides = array<i32>} : memref<16x128xf32, #tpu.memory_space<vmem>>, vector<1x128xf32>,
    %c1 = arith.constant 1 : index
    %4 = memref.load %arg1[%c1] : memref<16xi32, #tpu.memory_space<smem>>
    %5 = arith.index_cast %4 : i32 to index
    %c0_3 = arith.constant 0 : index
    %6 = vector.load %arg2[%5, %c0_3] : memref<50x128xf32, #tpu.memory_space<vmem>>, vector<1x128xf32>
    %c1_4 = arith.constant 1 : index
    %c0_5 = arith.constant 0 : index
    %7 = vector.load %arg9[%c1_4, %c0_5] : memref<16x128xf32, #tpu.memory_space<vmem>>, vector<1x128xf32>
    tpu.vector_store %arg9[%c1_4, %c0_5], %6 {strides = array<i32>} : memref<16x128xf32, #tpu.memory_space<vmem>>, vector<1x128xf32>,
    %c2 = arith.constant 2 : index
    %8 = memref.load %arg1[%c2] : memref<16xi32, #tpu.memory_space<smem>>
    %9 = arith.index_cast %8 : i32 to index
    %c0_6 = arith.constant 0 : index
    %10 = vector.load %arg2[%9, %c0_6] : memref<50x128xf32, #tpu.memory_space<vmem>>, vector<1x128xf32>
    %c2_7 = arith.constant 2 : index
    %c0_8 = arith.constant 0 : index
    %11 = vector.load %arg9[%c2_7, %c0_8] : memref<16x128xf32, #tpu.memory_space<vmem>>, vector<1x128xf32>
    tpu.vector_store %arg9[%c2_7, %c0_8], %10 {strides = array<i32>} : memref<16x128xf32, #tpu.memory_space<vmem>>, vector<1x128xf32>,
    %c3 = arith.constant 3 : index
    %12 = memref.load %arg1[%c3] : memref<16xi32, #tpu.memory_space<smem>>
    %13 = arith.index_cast %12 : i32 to index
    %c0_9 = arith.constant 0 : index
    %14 = vector.load %arg2[%13, %c0_9] : memref<50x128xf32, #tpu.memory_space<vmem>>, vector<1x128xf32>
    %c3_10 = arith.constant 3 : index
    %c0_11 = arith.constant 0 : index
    %15 = vector.load %arg9[%c3_10, %c0_11] : memref<16x128xf32, #tpu.memory_space<vmem>>, vector<1x128xf32>
    tpu.vector_store %arg9[%c3_10, %c0_11], %14 {strides = array<i32>} : memref<16x128xf32, #tpu.memory_space<vmem>>, vector<1x128xf32>,
    %c4 = arith.constant 4 : index
    %16 = memref.load %arg1[%c4] : memref<16xi32, #tpu.memory_space<smem>>
    %17 = arith.index_cast %16 : i32 to index
    %c0_12 = arith.constant 0 : index
    %18 = vector.load %arg2[%17, %c0_12] : memref<50x128xf32, #tpu.memory_space<vmem>>, vector<1x128xf32>
    %c4_13 = arith.constant 4 : index
    %c0_14 = arith.constant 0 : index
    %19 = vector.load %arg9[%c4_13, %c0_14] : memref<16x128xf32, #tpu.memory_space<vmem>>, vector<1x128xf32>
    tpu.vector_store %arg9[%c4_13, %c0_14], %18 {strides = array<i32>} : memref<16x128xf32, #tpu.memory_space<vmem>>, vector<1x128xf32>,
    %c5 = arith.constant 5 : index
    %20 = memref.load %arg1[%c5] : memref<16xi32, #tpu.memory_space<smem>>
    %21 = arith.index_cast %20 : i32 to index
    %c0_15 = arith.constant 0 : index
    %22 = vector.load %arg2[%21, %c0_15] : memref<50x128xf32, #tpu.memory_space<vmem>>, vector<1x128xf32>
    %c5_16 = arith.constant 5 : index
    %c0_17 = arith.constant 0 : index
    %23 = vector.load %arg9[%c5_16, %c0_17] : memref<16x128xf32, #tpu.memory_space<vmem>>, vector<1x128xf32>
    tpu.vector_store %arg9[%c5_16, %c0_17], %22 {strides = array<i32>} : memref<16x128xf32, #tpu.memory_space<vmem>>, vector<1x128xf32>,
    %c6 = arith.constant 6 : index
    %24 = memref.load %arg1[%c6] : memref<16xi32, #tpu.memory_space<smem>>
    %25 = arith.index_cast %24 : i32 to index
    %c0_18 = arith.constant 0 : index
    %26 = vector.load %arg2[%25, %c0_18] : memref<50x128xf32, #tpu.memory_space<vmem>>, vector<1x128xf32>
    %c6_19 = arith.constant 6 : index
    %c0_20 = arith.constant 0 : index
    %27 = vector.load %arg9[%c6_19, %c0_20] : memref<16x128xf32, #tpu.memory_space<vmem>>, vector<1x128xf32>
    tpu.vector_store %arg9[%c6_19, %c0_20], %26 {strides = array<i32>} : memref<16x128xf32, #tpu.memory_space<vmem>>, vector<1x128xf32>,
    %c7 = arith.constant 7 : index
    %28 = memref.load %arg1[%c7] : memref<16xi32, #tpu.memory_space<smem>>
    %29 = arith.index_cast %28 : i32 to index
    %c0_21 = arith.constant 0 : index
    %30 = vector.load %arg2[%29, %c0_21] : memref<50x128xf32, #tpu.memory_space<vmem>>, vector<1x128xf32>
    %c7_22 = arith.constant 7 : index
    %c0_23 = arith.constant 0 : index
    %31 = vector.load %arg9[%c7_22, %c0_23] : memref<16x128xf32, #tpu.memory_space<vmem>>, vector<1x128xf32>
    tpu.vector_store %arg9[%c7_22, %c0_23], %30 {strides = array<i32>} : memref<16x128xf32, #tpu.memory_space<vmem>>, vector<1x128xf32>,
    %c8 = arith.constant 8 : index
    %32 = memref.load %arg1[%c8] : memref<16xi32, #tpu.memory_space<smem>>
    %33 = arith.index_cast %32 : i32 to index
    %c0_24 = arith.constant 0 : index
    %34 = vector.load %arg2[%33, %c0_24] : memref<50x128xf32, #tpu.memory_space<vmem>>, vector<1x128xf32>
    %c8_25 = arith.constant 8 : index
    %c0_26 = arith.constant 0 : index
    %35 = vector.load %arg9[%c8_25, %c0_26] : memref<16x128xf32, #tpu.memory_space<vmem>>, vector<1x128xf32>
    tpu.vector_store %arg9[%c8_25, %c0_26], %34 {strides = array<i32>} : memref<16x128xf32, #tpu.memory_space<vmem>>, vector<1x128xf32>,
    %c9 = arith.constant 9 : index
    %36 = memref.load %arg1[%c9] : memref<16xi32, #tpu.memory_space<smem>>
    %37 = arith.index_cast %36 : i32 to index
    %c0_27 = arith.constant 0 : index
    %38 = vector.load %arg2[%37, %c0_27] : memref<50x128xf32, #tpu.memory_space<vmem>>, vector<1x128xf32>
    %c9_28 = arith.constant 9 : index
    %c0_29 = arith.constant 0 : index
    %39 = vector.load %arg9[%c9_28, %c0_29] : memref<16x128xf32, #tpu.memory_space<vmem>>, vector<1x128xf32>
    tpu.vector_store %arg9[%c9_28, %c0_29], %38 {strides = array<i32>} : memref<16x128xf32, #tpu.memory_space<vmem>>, vector<1x128xf32>,
    %c10 = arith.constant 10 : index
    %40 = memref.load %arg1[%c10] : memref<16xi32, #tpu.memory_space<smem>>
    %41 = arith.index_cast %40 : i32 to index
    %c0_30 = arith.constant 0 : index
    %42 = vector.load %arg2[%41, %c0_30] : memref<50x128xf32, #tpu.memory_space<vmem>>, vector<1x128xf32>
    %c10_31 = arith.constant 10 : index
    %c0_32 = arith.constant 0 : index
    %43 = vector.load %arg9[%c10_31, %c0_32] : memref<16x128xf32, #tpu.memory_space<vmem>>, vector<1x128xf32>
    tpu.vector_store %arg9[%c10_31, %c0_32], %42 {strides = array<i32>} : memref<16x128xf32, #tpu.memory_space<vmem>>, vector<1x128xf32>,
    %c11 = arith.constant 11 : index
    %44 = memref.load %arg1[%c11] : memref<16xi32, #tpu.memory_space<smem>>
    %45 = arith.index_cast %44 : i32 to index
    %c0_33 = arith.constant 0 : index
    %46 = vector.load %arg2[%45, %c0_33] : memref<50x128xf32, #tpu.memory_space<vmem>>, vector<1x128xf32>
    %c11_34 = arith.constant 11 : index
    %c0_35 = arith.constant 0 : index
    %47 = vector.load %arg9[%c11_34, %c0_35] : memref<16x128xf32, #tpu.memory_space<vmem>>, vector<1x128xf32>
    tpu.vector_store %arg9[%c11_34, %c0_35], %46 {strides = array<i32>} : memref<16x128xf32, #tpu.memory_space<vmem>>, vector<1x128xf32>,
    %c12 = arith.constant 12 : index
    %48 = memref.load %arg1[%c12] : memref<16xi32, #tpu.memory_space<smem>>
    %49 = arith.index_cast %48 : i32 to index
    %c0_36 = arith.constant 0 : index
    %50 = vector.load %arg2[%49, %c0_36] : memref<50x128xf32, #tpu.memory_space<vmem>>, vector<1x128xf32>
    %c12_37 = arith.constant 12 : index
    %c0_38 = arith.constant 0 : index
    %51 = vector.load %arg9[%c12_37, %c0_38] : memref<16x128xf32, #tpu.memory_space<vmem>>, vector<1x128xf32>
    tpu.vector_store %arg9[%c12_37, %c0_38], %50 {strides = array<i32>} : memref<16x128xf32, #tpu.memory_space<vmem>>, vector<1x128xf32>,
    %c13 = arith.constant 13 : index
    %52 = memref.load %arg1[%c13] : memref<16xi32, #tpu.memory_space<smem>>
    %53 = arith.index_cast %52 : i32 to index
    %c0_39 = arith.constant 0 : index
    %54 = vector.load %arg2[%53, %c0_39] : memref<50x128xf32, #tpu.memory_space<vmem>>, vector<1x128xf32>
    %c13_40 = arith.constant 13 : index
    %c0_41 = arith.constant 0 : index
    %55 = vector.load %arg9[%c13_40, %c0_41] : memref<16x128xf32, #tpu.memory_space<vmem>>, vector<1x128xf32>
    tpu.vector_store %arg9[%c13_40, %c0_41], %54 {strides = array<i32>} : memref<16x128xf32, #tpu.memory_space<vmem>>, vector<1x128xf32>,
    %c14 = arith.constant 14 : index
    %56 = memref.load %arg1[%c14] : memref<16xi32, #tpu.memory_space<smem>>
    %57 = arith.index_cast %56 : i32 to index
    %c0_42 = arith.constant 0 : index
    %58 = vector.load %arg2[%57, %c0_42] : memref<50x128xf32, #tpu.memory_space<vmem>>, vector<1x128xf32>
    %c14_43 = arith.constant 14 : index
    %c0_44 = arith.constant 0 : index
    %59 = vector.load %arg9[%c14_43, %c0_44] : memref<16x128xf32, #tpu.memory_space<vmem>>, vector<1x128xf32>
    tpu.vector_store %arg9[%c14_43, %c0_44], %58 {strides = array<i32>} : memref<16x128xf32, #tpu.memory_space<vmem>>, vector<1x128xf32>,
    %c15 = arith.constant 15 : index
    %60 = memref.load %arg1[%c15] : memref<16xi32, #tpu.memory_space<smem>>
    %61 = arith.index_cast %60 : i32 to index
    %c0_45 = arith.constant 0 : index
    %62 = vector.load %arg2[%61, %c0_45] : memref<50x128xf32, #tpu.memory_space<vmem>>, vector<1x128xf32>
    %c15_46 = arith.constant 15 : index
    %c0_47 = arith.constant 0 : index
    %63 = vector.load %arg9[%c15_46, %c0_47] : memref<16x128xf32, #tpu.memory_space<vmem>>, vector<1x128xf32>
    tpu.vector_store %arg9[%c15_46, %c0_47], %62 {strides = array<i32>} : memref<16x128xf32, #tpu.memory_space<vmem>>, vector<1x128xf32>,
    %c0_48 = arith.constant 0 : index
    %c0_49 = arith.constant 0 : index
    %64 = vector.load %arg3[%c0_48, %c0_49] : memref<32x128xf32, #tpu.memory_space<vmem>>, vector<32x128xf32>
    %65 = tpu.iota {dimensions = array<i32: 1>} : vector<2x128xi32>
    %c64_i32 = arith.constant 64 : i32
    %66 = vector.broadcast %c64_i32 : i32 to vector<2x128xi32>
    %67 = arith.cmpi sge, %65, %66 : vector<2x128xi32>
    %c96_i32 = arith.constant 96 : i32
    %68 = vector.broadcast %c96_i32 : i32 to vector<2x128xi32>
    %69 = arith.cmpi slt, %65, %68 : vector<2x128xi32>
    %70 = arith.andi %67, %69 : vector<2x128xi1>
    %cst = arith.constant 0.000000e+00 : f32
    %71 = vector.broadcast %cst : f32 to vector<2x32xf32>
    %cst_50 = arith.constant 0.000000e+00 : f32
    %72 = vector.broadcast %cst_50 : f32 to vector<2x32xf32>
    %c0_51 = arith.constant 0 : index
    %c0_52 = arith.constant 0 : index
    %73 = vector.load %arg9[%c0_51, %c0_52] : memref<16x128xf32, #tpu.memory_space<vmem>>, vector<2x128xf32>
    %cst_53 = arith.constant dense<0.000000e+00> : vector<2x128xf32>
    %74 = tpu.matmul %71, %64, %cst_53 {dimension_numbers = #tpu.dot_dimension_numbers<[1], [0], [0], [1], [0, 0, 1, 1], [], []>} : vector<2x32xf32>, vector<32x128xf32>, vector<2x128xf32> -> vector<2x128xf32>
    %75 = arith.addf %73, %74 : vector<2x128xf32>
    %76 = math.tanh %75 : vector<2x128xf32>
    %cst_54 = arith.constant 5.000000e-01 : f32
    %77 = vector.broadcast %cst_54 : f32 to vector<2x128xf32>
    %78 = arith.mulf %77, %76 : vector<2x128xf32>
    %cst_55 = arith.constant 5.000000e-01 : f32
    %79 = vector.broadcast %cst_55 : f32 to vector<2x128xf32>
    %80 = arith.addf %78, %79 : vector<2x128xf32>
    %81 = arith.select %70, %76, %80 : vector<2x128xi1>, vector<2x128xf32>
    %82 = vector.extract_strided_slice %81 {offsets = [0, 0], sizes = [2, 32], strides = [1, 1]} : vector<2x128xf32> to vector<2x32xf32>
    %83 = vector.extract_strided_slice %81 {offsets = [0, 32], sizes = [2, 32], strides = [1, 1]} : vector<2x128xf32> to vector<2x32xf32>
    %84 = vector.extract_strided_slice %81 {offsets = [0, 64], sizes = [2, 32], strides = [1, 1]} : vector<2x128xf32> to vector<2x32xf32>
    %85 = vector.extract_strided_slice %81 {offsets = [0, 96], sizes = [2, 32], strides = [1, 1]} : vector<2x128xf32> to vector<2x32xf32>
    %86 = arith.mulf %83, %72 : vector<2x32xf32>
    %87 = arith.mulf %82, %84 : vector<2x32xf32>
    %88 = arith.addf %86, %87 : vector<2x32xf32>
    %89 = math.tanh %88 : vector<2x32xf32>
    %90 = arith.mulf %85, %89 : vector<2x32xf32>
    %c0_56 = arith.constant 0 : index
    %c0_57 = arith.constant 0 : index
    %c0_58 = arith.constant 0 : index
    %91 = vector.load %arg6[%c0_56, %c0_57, %c0_58] : memref<8x2x32xf32, #tpu.memory_space<vmem>>, vector<1x2x32xf32>
    %92 = vector.shape_cast %91 : vector<1x2x32xf32> to vector<2x32xf32>
    %93 = vector.shape_cast %90 : vector<2x32xf32> to vector<1x2x32xf32>
    tpu.vector_store %arg6[%c0_56, %c0_57, %c0_58], %93 {strides = array<i32>} : memref<8x2x32xf32, #tpu.memory_space<vmem>>, vector<1x2x32xf32>,
    %c2_59 = arith.constant 2 : index
    %c0_60 = arith.constant 0 : index
    %94 = vector.load %arg9[%c2_59, %c0_60] : memref<16x128xf32, #tpu.memory_space<vmem>>, vector<2x128xf32>
    %cst_61 = arith.constant dense<0.000000e+00> : vector<2x128xf32>
    %95 = tpu.matmul %90, %64, %cst_61 {dimension_numbers = #tpu.dot_dimension_numbers<[1], [0], [0], [1], [0, 0, 1, 1], [], []>} : vector<2x32xf32>, vector<32x128xf32>, vector<2x128xf32> -> vector<2x128xf32>
    %96 = arith.addf %94, %95 : vector<2x128xf32>
    %97 = math.tanh %96 : vector<2x128xf32>
    %cst_62 = arith.constant 5.000000e-01 : f32
    %98 = vector.broadcast %cst_62 : f32 to vector<2x128xf32>
    %99 = arith.mulf %98, %97 : vector<2x128xf32>
    %cst_63 = arith.constant 5.000000e-01 : f32
    %100 = vector.broadcast %cst_63 : f32 to vector<2x128xf32>
    %101 = arith.addf %99, %100 : vector<2x128xf32>
    %102 = arith.select %70, %97, %101 : vector<2x128xi1>, vector<2x128xf32>
    %103 = vector.extract_strided_slice %102 {offsets = [0, 0], sizes = [2, 32], strides = [1, 1]} : vector<2x128xf32> to vector<2x32xf32>
    %104 = vector.extract_strided_slice %102 {offsets = [0, 32], sizes = [2, 32], strides = [1, 1]} : vector<2x128xf32> to vector<2x32xf32>
    %105 = vector.extract_strided_slice %102 {offsets = [0, 64], sizes = [2, 32], strides = [1, 1]} : vector<2x128xf32> to vector<2x32xf32>
    %106 = vector.extract_strided_slice %102 {offsets = [0, 96], sizes = [2, 32], strides = [1, 1]} : vector<2x128xf32> to vector<2x32xf32>
    %107 = arith.mulf %104, %88 : vector<2x32xf32>
    %108 = arith.mulf %103, %105 : vector<2x32xf32>
    %109 = arith.addf %107, %108 : vector<2x32xf32>
    %110 = math.tanh %109 : vector<2x32xf32>
    %111 = arith.mulf %106, %110 : vector<2x32xf32>
    %c1_64 = arith.constant 1 : index
    %c0_65 = arith.constant 0 : index
    %c0_66 = arith.constant 0 : index
    %112 = vector.load %arg6[%c1_64, %c0_65, %c0_66] : memref<8x2x32xf32, #tpu.memory_space<vmem>>, vector<1x2x32xf32>
    %113 = vector.shape_cast %112 : vector<1x2x32xf32> to vector<2x32xf32>
    %114 = vector.shape_cast %111 : vector<2x32xf32> to vector<1x2x32xf32>
    tpu.vector_store %arg6[%c1_64, %c0_65, %c0_66], %114 {strides = array<i32>} : memref<8x2x32xf32, #tpu.memory_space<vmem>>, vector<1x2x32xf32>,
    %c4_67 = arith.constant 4 : index
    %c0_68 = arith.constant 0 : index
    %115 = vector.load %arg9[%c4_67, %c0_68] : memref<16x128xf32, #tpu.memory_space<vmem>>, vector<2x128xf32>
    %cst_69 = arith.constant dense<0.000000e+00> : vector<2x128xf32>
    %116 = tpu.matmul %111, %64, %cst_69 {dimension_numbers = #tpu.dot_dimension_numbers<[1], [0], [0], [1], [0, 0, 1, 1], [], []>} : vector<2x32xf32>, vector<32x128xf32>, vector<2x128xf32> -> vector<2x128xf32>
    %117 = arith.addf %115, %116 : vector<2x128xf32>
    %118 = math.tanh %117 : vector<2x128xf32>
    %cst_70 = arith.constant 5.000000e-01 : f32
    %119 = vector.broadcast %cst_70 : f32 to vector<2x128xf32>
    %120 = arith.mulf %119, %118 : vector<2x128xf32>
    %cst_71 = arith.constant 5.000000e-01 : f32
    %121 = vector.broadcast %cst_71 : f32 to vector<2x128xf32>
    %122 = arith.addf %120, %121 : vector<2x128xf32>
    %123 = arith.select %70, %118, %122 : vector<2x128xi1>, vector<2x128xf32>
    %124 = vector.extract_strided_slice %123 {offsets = [0, 0], sizes = [2, 32], strides = [1, 1]} : vector<2x128xf32> to vector<2x32xf32>
    %125 = vector.extract_strided_slice %123 {offsets = [0, 32], sizes = [2, 32], strides = [1, 1]} : vector<2x128xf32> to vector<2x32xf32>
    %126 = vector.extract_strided_slice %123 {offsets = [0, 64], sizes = [2, 32], strides = [1, 1]} : vector<2x128xf32> to vector<2x32xf32>
    %127 = vector.extract_strided_slice %123 {offsets = [0, 96], sizes = [2, 32], strides = [1, 1]} : vector<2x128xf32> to vector<2x32xf32>
    %128 = arith.mulf %125, %109 : vector<2x32xf32>
    %129 = arith.mulf %124, %126 : vector<2x32xf32>
    %130 = arith.addf %128, %129 : vector<2x32xf32>
    %131 = math.tanh %130 : vector<2x32xf32>
    %132 = arith.mulf %127, %131 : vector<2x32xf32>
    %c2_72 = arith.constant 2 : index
    %c0_73 = arith.constant 0 : index
    %c0_74 = arith.constant 0 : index
    %133 = vector.load %arg6[%c2_72, %c0_73, %c0_74] : memref<8x2x32xf32, #tpu.memory_space<vmem>>, vector<1x2x32xf32>
    %134 = vector.shape_cast %133 : vector<1x2x32xf32> to vector<2x32xf32>
    %135 = vector.shape_cast %132 : vector<2x32xf32> to vector<1x2x32xf32>
    tpu.vector_store %arg6[%c2_72, %c0_73, %c0_74], %135 {strides = array<i32>} : memref<8x2x32xf32, #tpu.memory_space<vmem>>, vector<1x2x32xf32>,
    %c6_75 = arith.constant 6 : index
    %c0_76 = arith.constant 0 : index
    %136 = vector.load %arg9[%c6_75, %c0_76] : memref<16x128xf32, #tpu.memory_space<vmem>>, vector<2x128xf32>
    %cst_77 = arith.constant dense<0.000000e+00> : vector<2x128xf32>
    %137 = tpu.matmul %132, %64, %cst_77 {dimension_numbers = #tpu.dot_dimension_numbers<[1], [0], [0], [1], [0, 0, 1, 1], [], []>} : vector<2x32xf32>, vector<32x128xf32>, vector<2x128xf32> -> vector<2x128xf32>
    %138 = arith.addf %136, %137 : vector<2x128xf32>
    %139 = math.tanh %138 : vector<2x128xf32>
    %cst_78 = arith.constant 5.000000e-01 : f32
    %140 = vector.broadcast %cst_78 : f32 to vector<2x128xf32>
    %141 = arith.mulf %140, %139 : vector<2x128xf32>
    %cst_79 = arith.constant 5.000000e-01 : f32
    %142 = vector.broadcast %cst_79 : f32 to vector<2x128xf32>
    %143 = arith.addf %141, %142 : vector<2x128xf32>
    %144 = arith.select %70, %139, %143 : vector<2x128xi1>, vector<2x128xf32>
    %145 = vector.extract_strided_slice %144 {offsets = [0, 0], sizes = [2, 32], strides = [1, 1]} : vector<2x128xf32> to vector<2x32xf32>
    %146 = vector.extract_strided_slice %144 {offsets = [0, 32], sizes = [2, 32], strides = [1, 1]} : vector<2x128xf32> to vector<2x32xf32>
    %147 = vector.extract_strided_slice %144 {offsets = [0, 64], sizes = [2, 32], strides = [1, 1]} : vector<2x128xf32> to vector<2x32xf32>
    %148 = vector.extract_strided_slice %144 {offsets = [0, 96], sizes = [2, 32], strides = [1, 1]} : vector<2x128xf32> to vector<2x32xf32>
    %149 = arith.mulf %146, %130 : vector<2x32xf32>
    %150 = arith.mulf %145, %147 : vector<2x32xf32>
    %151 = arith.addf %149, %150 : vector<2x32xf32>
    %152 = math.tanh %151 : vector<2x32xf32>
    %153 = arith.mulf %148, %152 : vector<2x32xf32>
    %c3_80 = arith.constant 3 : index
    %c0_81 = arith.constant 0 : index
    %c0_82 = arith.constant 0 : index
    %154 = vector.load %arg6[%c3_80, %c0_81, %c0_82] : memref<8x2x32xf32, #tpu.memory_space<vmem>>, vector<1x2x32xf32>
    %155 = vector.shape_cast %154 : vector<1x2x32xf32> to vector<2x32xf32>
    %156 = vector.shape_cast %153 : vector<2x32xf32> to vector<1x2x32xf32>
    tpu.vector_store %arg6[%c3_80, %c0_81, %c0_82], %156 {strides = array<i32>} : memref<8x2x32xf32, #tpu.memory_space<vmem>>, vector<1x2x32xf32>,
    %c8_83 = arith.constant 8 : index
    %c0_84 = arith.constant 0 : index
    %157 = vector.load %arg9[%c8_83, %c0_84] : memref<16x128xf32, #tpu.memory_space<vmem>>, vector<2x128xf32>
    %cst_85 = arith.constant dense<0.000000e+00> : vector<2x128xf32>
    %158 = tpu.matmul %153, %64, %cst_85 {dimension_numbers = #tpu.dot_dimension_numbers<[1], [0], [0], [1], [0, 0, 1, 1], [], []>} : vector<2x32xf32>, vector<32x128xf32>, vector<2x128xf32> -> vector<2x128xf32>
    %159 = arith.addf %157, %158 : vector<2x128xf32>
    %160 = math.tanh %159 : vector<2x128xf32>
    %cst_86 = arith.constant 5.000000e-01 : f32
    %161 = vector.broadcast %cst_86 : f32 to vector<2x128xf32>
    %162 = arith.mulf %161, %160 : vector<2x128xf32>
    %cst_87 = arith.constant 5.000000e-01 : f32
    %163 = vector.broadcast %cst_87 : f32 to vector<2x128xf32>
    %164 = arith.addf %162, %163 : vector<2x128xf32>
    %165 = arith.select %70, %160, %164 : vector<2x128xi1>, vector<2x128xf32>
    %166 = vector.extract_strided_slice %165 {offsets = [0, 0], sizes = [2, 32], strides = [1, 1]} : vector<2x128xf32> to vector<2x32xf32>
    %167 = vector.extract_strided_slice %165 {offsets = [0, 32], sizes = [2, 32], strides = [1, 1]} : vector<2x128xf32> to vector<2x32xf32>
    %168 = vector.extract_strided_slice %165 {offsets = [0, 64], sizes = [2, 32], strides = [1, 1]} : vector<2x128xf32> to vector<2x32xf32>
    %169 = vector.extract_strided_slice %165 {offsets = [0, 96], sizes = [2, 32], strides = [1, 1]} : vector<2x128xf32> to vector<2x32xf32>
    %170 = arith.mulf %167, %151 : vector<2x32xf32>
    %171 = arith.mulf %166, %168 : vector<2x32xf32>
    %172 = arith.addf %170, %171 : vector<2x32xf32>
    %173 = math.tanh %172 : vector<2x32xf32>
    %174 = arith.mulf %169, %173 : vector<2x32xf32>
    %c4_88 = arith.constant 4 : index
    %c0_89 = arith.constant 0 : index
    %c0_90 = arith.constant 0 : index
    %175 = vector.load %arg6[%c4_88, %c0_89, %c0_90] : memref<8x2x32xf32, #tpu.memory_space<vmem>>, vector<1x2x32xf32>
    %176 = vector.shape_cast %175 : vector<1x2x32xf32> to vector<2x32xf32>
    %177 = vector.shape_cast %174 : vector<2x32xf32> to vector<1x2x32xf32>
    tpu.vector_store %arg6[%c4_88, %c0_89, %c0_90], %177 {strides = array<i32>} : memref<8x2x32xf32, #tpu.memory_space<vmem>>, vector<1x2x32xf32>,
    %c10_91 = arith.constant 10 : index
    %c0_92 = arith.constant 0 : index
    %178 = vector.load %arg9[%c10_91, %c0_92] : memref<16x128xf32, #tpu.memory_space<vmem>>, vector<2x128xf32>
    %cst_93 = arith.constant dense<0.000000e+00> : vector<2x128xf32>
    %179 = tpu.matmul %174, %64, %cst_93 {dimension_numbers = #tpu.dot_dimension_numbers<[1], [0], [0], [1], [0, 0, 1, 1], [], []>} : vector<2x32xf32>, vector<32x128xf32>, vector<2x128xf32> -> vector<2x128xf32>
    %180 = arith.addf %178, %179 : vector<2x128xf32>
    %181 = math.tanh %180 : vector<2x128xf32>
    %cst_94 = arith.constant 5.000000e-01 : f32
    %182 = vector.broadcast %cst_94 : f32 to vector<2x128xf32>
    %183 = arith.mulf %182, %181 : vector<2x128xf32>
    %cst_95 = arith.constant 5.000000e-01 : f32
    %184 = vector.broadcast %cst_95 : f32 to vector<2x128xf32>
    %185 = arith.addf %183, %184 : vector<2x128xf32>
    %186 = arith.select %70, %181, %185 : vector<2x128xi1>, vector<2x128xf32>
    %187 = vector.extract_strided_slice %186 {offsets = [0, 0], sizes = [2, 32], strides = [1, 1]} : vector<2x128xf32> to vector<2x32xf32>
    %188 = vector.extract_strided_slice %186 {offsets = [0, 32], sizes = [2, 32], strides = [1, 1]} : vector<2x128xf32> to vector<2x32xf32>
    %189 = vector.extract_strided_slice %186 {offsets = [0, 64], sizes = [2, 32], strides = [1, 1]} : vector<2x128xf32> to vector<2x32xf32>
    %190 = vector.extract_strided_slice %186 {offsets = [0, 96], sizes = [2, 32], strides = [1, 1]} : vector<2x128xf32> to vector<2x32xf32>
    %191 = arith.mulf %188, %172 : vector<2x32xf32>
    %192 = arith.mulf %187, %189 : vector<2x32xf32>
    %193 = arith.addf %191, %192 : vector<2x32xf32>
    %194 = math.tanh %193 : vector<2x32xf32>
    %195 = arith.mulf %190, %194 : vector<2x32xf32>
    %c5_96 = arith.constant 5 : index
    %c0_97 = arith.constant 0 : index
    %c0_98 = arith.constant 0 : index
    %196 = vector.load %arg6[%c5_96, %c0_97, %c0_98] : memref<8x2x32xf32, #tpu.memory_space<vmem>>, vector<1x2x32xf32>
    %197 = vector.shape_cast %196 : vector<1x2x32xf32> to vector<2x32xf32>
    %198 = vector.shape_cast %195 : vector<2x32xf32> to vector<1x2x32xf32>
    tpu.vector_store %arg6[%c5_96, %c0_97, %c0_98], %198 {strides = array<i32>} : memref<8x2x32xf32, #tpu.memory_space<vmem>>, vector<1x2x32xf32>,
    %c12_99 = arith.constant 12 : index
    %c0_100 = arith.constant 0 : index
    %199 = vector.load %arg9[%c12_99, %c0_100] : memref<16x128xf32, #tpu.memory_space<vmem>>, vector<2x128xf32>
    %cst_101 = arith.constant dense<0.000000e+00> : vector<2x128xf32>
    %200 = tpu.matmul %195, %64, %cst_101 {dimension_numbers = #tpu.dot_dimension_numbers<[1], [0], [0], [1], [0, 0, 1, 1], [], []>} : vector<2x32xf32>, vector<32x128xf32>, vector<2x128xf32> -> vector<2x128xf32>
    %201 = arith.addf %199, %200 : vector<2x128xf32>
    %202 = math.tanh %201 : vector<2x128xf32>
    %cst_102 = arith.constant 5.000000e-01 : f32
    %203 = vector.broadcast %cst_102 : f32 to vector<2x128xf32>
    %204 = arith.mulf %203, %202 : vector<2x128xf32>
    %cst_103 = arith.constant 5.000000e-01 : f32
    %205 = vector.broadcast %cst_103 : f32 to vector<2x128xf32>
    %206 = arith.addf %204, %205 : vector<2x128xf32>
    %207 = arith.select %70, %202, %206 : vector<2x128xi1>, vector<2x128xf32>
    %208 = vector.extract_strided_slice %207 {offsets = [0, 0], sizes = [2, 32], strides = [1, 1]} : vector<2x128xf32> to vector<2x32xf32>
    %209 = vector.extract_strided_slice %207 {offsets = [0, 32], sizes = [2, 32], strides = [1, 1]} : vector<2x128xf32> to vector<2x32xf32>
    %210 = vector.extract_strided_slice %207 {offsets = [0, 64], sizes = [2, 32], strides = [1, 1]} : vector<2x128xf32> to vector<2x32xf32>
    %211 = vector.extract_strided_slice %207 {offsets = [0, 96], sizes = [2, 32], strides = [1, 1]} : vector<2x128xf32> to vector<2x32xf32>
    %212 = arith.mulf %209, %193 : vector<2x32xf32>
    %213 = arith.mulf %208, %210 : vector<2x32xf32>
    %214 = arith.addf %212, %213 : vector<2x32xf32>
    %215 = math.tanh %214 : vector<2x32xf32>
    %216 = arith.mulf %211, %215 : vector<2x32xf32>
    %c6_104 = arith.constant 6 : index
    %c0_105 = arith.constant 0 : index
    %c0_106 = arith.constant 0 : index
    %217 = vector.load %arg6[%c6_104, %c0_105, %c0_106] : memref<8x2x32xf32, #tpu.memory_space<vmem>>, vector<1x2x32xf32>
    %218 = vector.shape_cast %217 : vector<1x2x32xf32> to vector<2x32xf32>
    %219 = vector.shape_cast %216 : vector<2x32xf32> to vector<1x2x32xf32>
    tpu.vector_store %arg6[%c6_104, %c0_105, %c0_106], %219 {strides = array<i32>} : memref<8x2x32xf32, #tpu.memory_space<vmem>>, vector<1x2x32xf32>,
    %c14_107 = arith.constant 14 : index
    %c0_108 = arith.constant 0 : index
    %220 = vector.load %arg9[%c14_107, %c0_108] : memref<16x128xf32, #tpu.memory_space<vmem>>, vector<2x128xf32>
    %cst_109 = arith.constant dense<0.000000e+00> : vector<2x128xf32>
    %221 = tpu.matmul %216, %64, %cst_109 {dimension_numbers = #tpu.dot_dimension_numbers<[1], [0], [0], [1], [0, 0, 1, 1], [], []>} : vector<2x32xf32>, vector<32x128xf32>, vector<2x128xf32> -> vector<2x128xf32>
    %222 = arith.addf %220, %221 : vector<2x128xf32>
    %223 = math.tanh %222 : vector<2x128xf32>
    %cst_110 = arith.constant 5.000000e-01 : f32
    %224 = vector.broadcast %cst_110 : f32 to vector<2x128xf32>
    %225 = arith.mulf %224, %223 : vector<2x128xf32>
    %cst_111 = arith.constant 5.000000e-01 : f32
    %226 = vector.broadcast %cst_111 : f32 to vector<2x128xf32>
    %227 = arith.addf %225, %226 : vector<2x128xf32>
    %228 = arith.select %70, %223, %227 : vector<2x128xi1>, vector<2x128xf32>
    %229 = vector.extract_strided_slice %228 {offsets = [0, 0], sizes = [2, 32], strides = [1, 1]} : vector<2x128xf32> to vector<2x32xf32>
    %230 = vector.extract_strided_slice %228 {offsets = [0, 32], sizes = [2, 32], strides = [1, 1]} : vector<2x128xf32> to vector<2x32xf32>
    %231 = vector.extract_strided_slice %228 {offsets = [0, 64], sizes = [2, 32], strides = [1, 1]} : vector<2x128xf32> to vector<2x32xf32>
    %232 = vector.extract_strided_slice %228 {offsets = [0, 96], sizes = [2, 32], strides = [1, 1]} : vector<2x128xf32> to vector<2x32xf32>
    %233 = arith.mulf %230, %214 : vector<2x32xf32>
    %234 = arith.mulf %229, %231 : vector<2x32xf32>
    %235 = arith.addf %233, %234 : vector<2x32xf32>
    %236 = math.tanh %235 : vector<2x32xf32>
    %237 = arith.mulf %232, %236 : vector<2x32xf32>
    %c7_112 = arith.constant 7 : index
    %c0_113 = arith.constant 0 : index
    %c0_114 = arith.constant 0 : index
    %238 = vector.load %arg6[%c7_112, %c0_113, %c0_114] : memref<8x2x32xf32, #tpu.memory_space<vmem>>, vector<1x2x32xf32>
    %239 = vector.shape_cast %238 : vector<1x2x32xf32> to vector<2x32xf32>
    %240 = vector.shape_cast %237 : vector<2x32xf32> to vector<1x2x32xf32>
    tpu.vector_store %arg6[%c7_112, %c0_113, %c0_114], %240 {strides = array<i32>} : memref<8x2x32xf32, #tpu.memory_space<vmem>>, vector<1x2x32xf32>,
    %c0_115 = arith.constant 0 : index
    %c0_116 = arith.constant 0 : index
    %241 = vector.load %arg4[%c0_115, %c0_116] : memref<32x16xf32, #tpu.memory_space<vmem>>, vector<32x16xf32>
    %cst_117 = arith.constant dense<0.000000e+00> : vector<2x16xf32>
    %242 = tpu.matmul %237, %241, %cst_117 {dimension_numbers = #tpu.dot_dimension_numbers<[1], [0], [0], [1], [0, 0, 1, 1], [], []>} : vector<2x32xf32>, vector<32x16xf32>, vector<2x16xf32> -> vector<2x16xf32>
    %c0_118 = arith.constant 0 : index
    %c0_119 = arith.constant 0 : index
    %243 = vector.load %arg5[%c0_118, %c0_119] : memref<1x16xf32, #tpu.memory_space<vmem>>, vector<1x16xf32>
    %244 = vector.broadcast %243 : vector<1x16xf32> to vector<2x16xf32>
    %245 = arith.addf %242, %244 : vector<2x16xf32>
    %246 = vector.extract_strided_slice %245 {offsets = [0, 0], sizes = [2, 8], strides = [1, 1]} : vector<2x16xf32> to vector<2x8xf32>
    %c0_120 = arith.constant 0 : index
    %c0_121 = arith.constant 0 : index
    %247 = vector.load %arg7[%c0_120, %c0_121] : memref<2x8xf32, #tpu.memory_space<vmem>>, vector<2x8xf32>
    tpu.vector_store %arg7[%c0_120, %c0_121], %246 {strides = array<i32>} : memref<2x8xf32, #tpu.memory_space<vmem>>, vector<2x8xf32>,
    %248 = vector.extract_strided_slice %245 {offsets = [0, 8], sizes = [2, 8], strides = [1, 1]} : vector<2x16xf32> to vector<2x8xf32>
    %c0_122 = arith.constant 0 : index
    %c0_123 = arith.constant 0 : index
    %249 = vector.load %arg8[%c0_122, %c0_123] : memref<2x8xf32, #tpu.memory_space<vmem>>, vector<2x8xf32>
    tpu.vector_store %arg8[%c0_122, %c0_123], %248 {strides = array<i32>} : memref<2x8xf32, #tpu.memory_space<vmem>>, vector<2x8xf32>,
    return
  }
  func.func @transform_0(%arg0: i32, %arg1: memref<16xi32, #tpu.memory_space<smem>>) -> (i32, i32) {
    %c0_i32 = arith.constant 0 : i32
    %c0_i32_0 = arith.constant 0 : i32
    %c0_i32_1 = arith.constant 0 : i32
    return %c0_i32, %c0_i32_0 : i32, i32
  }
  func.func @transform_1(%arg0: i32, %arg1: memref<16xi32, #tpu.memory_space<smem>>) -> (i32, i32) {
    %c0_i32 = arith.constant 0 : i32
    %c0_i32_0 = arith.constant 0 : i32
    %c0_i32_1 = arith.constant 0 : i32
    return %c0_i32, %c0_i32_0 : i32, i32
  }
  func.func @transform_2(%arg0: i32, %arg1: memref<16xi32, #tpu.memory_space<smem>>) -> (i32, i32) {
    %c0_i32 = arith.constant 0 : i32
    %c0_i32_0 = arith.constant 0 : i32
    %c0_i32_1 = arith.constant 0 : i32
    return %c0_i32, %c0_i32_0 : i32, i32
  }
  func.func @transform_3(%arg0: i32, %arg1: memref<16xi32, #tpu.memory_space<smem>>) -> (i32, i32) {
    %c0_i32 = arith.constant 0 : i32
    %c0_i32_0 = arith.constant 0 : i32
    %c0_i32_1 = arith.constant 0 : i32
    return %c0_i32, %c0_i32_0 : i32, i32
  }
  func.func @transform_4(%arg0: i32, %arg1: memref<16xi32, #tpu.memory_space<smem>>) -> (i32, i32, i32) {
    %c0_i32 = arith.constant 0 : i32
    %c0_i32_0 = arith.constant 0 : i32
    %c0_i32_1 = arith.constant 0 : i32
    %c0_i32_2 = arith.constant 0 : i32
    return %c0_i32, %c0_i32_0, %c0_i32_1 : i32, i32, i32
  }
  func.func @transform_5(%arg0: i32, %arg1: memref<16xi32, #tpu.memory_space<smem>>) -> (i32, i32) {
    %c0_i32 = arith.constant 0 : i32
    %c0_i32_0 = arith.constant 0 : i32
    %c0_i32_1 = arith.constant 0 : i32
    return %c0_i32, %c0_i32_0 : i32, i32
  }
  func.func @transform_6(%arg0: i32, %arg1: memref<16xi32, #tpu.memory_space<smem>>) -> (i32, i32) {
    %c0_i32 = arith.constant 0 : i32
    %c0_i32_0 = arith.constant 0 : i32
    %c0_i32_1 = arith.constant 0 : i32
    return %c0_i32, %c0_i32_0 : i32, i32
  }
}

</mosaic_0001>

<bundles_post_ra>
// kernel: squeeze.1
= control target key start
LH: loop header
LB: loop body
LE: loop exit
PB: predicated region body
PF: predicated region fallthrough
CT: control target
= control target key end

     0   :  { %s67_s10 = smov 14   ;;  %s68_s11 = smov 10   ;;  %vm3_vm0 = vcmask 15360   ;;  %vm9_vm1 = vcmask 130160   ;;  %vm15_vm2 = vcmask 113760   ;;  %vm21_vm3 = vcmask 97360   ;;  %s111_s0 = inlined_call_operand.vmem [shape: s32[8,2,1], index: 0, kind: input, shape index: {}]   ;;  %s112_s1 = inlined_call_operand.vmem [shape: s32[16], index: 1, kind: output, shape index: {}]  }
   0x1   :  { %v53_v0 = vld [vmem:[%s111_s0 + $0x7] sm:$0x1]   ;;  %v55_v1 = vld [vmem:[%s111_s0 + $0x5] sm:$0x1]   ;;  %v54_v2 = vld [vmem:[%s111_s0 + $0x6] sm:$0x1]  }
   0x2   :  { %7 = vrot.lane.b32.xlu0 %v53_v0, %s67_s10  ;;  %19 = vrot.lane.b32.xlu1 %v55_v1, %s68_s11  ;;  %v56_v3 = vld [vmem:[%s111_s0 + $0x4] sm:$0x1]   ;;  %v2_v4 = vld [vmem:[%s111_s0] sm:$0x1]   ;;  %s69_s18 = smov 12   ;;  %s70_s19 = smov 8  }
   0x3   :  { %4 = vst.msk [vmem:[#allocation0] sm:$0x1] %vm3_vm0, %v2_v4   ;;  %v57_v5 = vld [vmem:[%s111_s0 + $0x3] sm:$0x1]   ;;  %v58_v6 = vld [vmem:[%s111_s0 + $0x2] sm:$0x1]  }
   0x4   :  { %s71_s24 = smov 6   ;;  %s72_s25 = smov 4   ;;  %v59_v7 = vld [vmem:[%s111_s0 + $0x1] sm:$0x1]   ;;  %vm27_vm4 = vcmask 80960   ;;  %vm33_vm5 = vcmask 64560  }
   0x5   :  { %s73_s0 = smov 2   ;;  %vm39_vm6 = vcmask 48160   ;;  %vm45_vm7 = vcmask 31760  }
   0x6   :  { %13 = vrot.lane.b32.xlu0 %v54_v2, %s69_s18  ;;  %25 = vrot.lane.b32.xlu1 %v56_v3, %s70_s19 }
   0xa   :  { %31 = vrot.lane.b32.xlu0 %v57_v5, %s71_s24  ;;  %37 = vrot.lane.b32.xlu1 %v58_v6, %s72_s25 }
   0xe   :  { %43 = vrot.lane.b32.xlu0 %v59_v7, %s73_s0 }
  0x74   :  { %v8_v8 = vpop.permute.xlu0 %7   ;;  %v20_v9 = vpop.permute.xlu1 %19  }
  0x75   :  { %10 = vst.msk [vmem:[#allocation0] sm:$0x1] %vm9_vm1, %v8_v8  }
  0x78   :  { %v14_v10 = vpop.permute.xlu0 %13   ;;  %v26_v11 = vpop.permute.xlu1 %25  }
  0x79   :  { %16 = vst.msk [vmem:[#allocation0] sm:$0x1] %vm15_vm2, %v14_v10  }
  0x7a   :  { %22 = vst.msk [vmem:[#allocation0] sm:$0x1] %vm21_vm3, %v20_v9  }
  0x7b   :  { %28 = vst.msk [vmem:[#allocation0] sm:$0x1] %vm27_vm4, %v26_v11  }
  0x7c   :  { %v32_v12 = vpop.permute.xlu0 %31   ;;  %v38_v13 = vpop.permute.xlu1 %37  }
  0x7d   :  { %34 = vst.msk [vmem:[#allocation0] sm:$0x1] %vm33_vm5, %v32_v12  }
  0x7e   :  { %40 = vst.msk [vmem:[#allocation0] sm:$0x1] %vm39_vm6, %v38_v13  }
  0x80   :  { %v44_v14 = vpop.permute.xlu0 %43  }
  0x81   :  { %46 = vst.msk [vmem:[#allocation0] sm:$0x1] %vm45_vm7, %v44_v14  }
  0x88   :  { %v50_v15 = vld [vmem:[#allocation0] sm:$0x1] }
  0x89   :  { %52 = vst [vmem:[%s112_s1] sm:$0x1] %v50_v15 }

// kernel: vae_encoder_forward.1
= control target key start
LH: loop header
LB: loop body
LE: loop exit
PB: predicated region body
PF: predicated region fallthrough
CT: control target
= control target key end

     0   :  { %s1705_s0 = inlined_call_operand.vmem [shape: s32[16], index: 0, kind: input, shape index: {}]   ;;  %s1706_s1 = inlined_call_operand.vmem [shape: f32[50,128], index: 1, kind: input, shape index: {}]   ;;  %s1707_s2 = inlined_call_operand.hbm [shape: f32[32,128], index: 2, kind: input, shape index: {}]   ;;  %s1708_s3 = inlined_call_operand.vmem [shape: f32[32,16], index: 3, kind: input, shape index: {}]   ;;  %s1709_s4 = inlined_call_operand.vmem [shape: f32[1,16], index: 4, kind: input, shape index: {}]   ;;  %s1710_s5 = inlined_call_operand.hbm [shape: f32[8,2,32], index: 5, kind: output, shape index: {0}]   ;;  %s1711_s6 = inlined_call_operand.vmem [shape: f32[2,8], index: 6, kind: output, shape index: {1}]   ;;  %s1712_s7 = inlined_call_operand.hbm [shape: f32[2,8], index: 7, kind: output, shape index: {2}]  }
   0x1   :  { %s13_s26 = sshll.u32 %s1705_s0, 4  ;;  %s14_s26 = int_to_ptr.vmem [resolvable:$true] %s13_s26 }
   0x2   :  { %s1334_s27 = scalar_lea.vmem %s14_s26, 16  ;;  %p1339_p1 = scmp.lt.s32.totalorder %s14_s26, %s14_s26 }
   0x3   :  { %p1335_p0 = scmp.ne.s32.totalorder %s14_s26, %s1334_s27  ;;  %p1340_p2 = scmp.lt.s32.totalorder %s1334_s27, %s1334_s27 }
   0x5   :  { %p1341_p3 = por %p1340_p2, %p1339_p1 }
   0x7   :  { %p1342_p4 = pnand %p1341_p3, %p1335_p0 }
   0x9   :  { %1345 = shalt.err (!%p1342_p4)  }
   0xa   :  { %s1420_s28 = smov [#allocation4]  }
   0xb   :  { %16 = dma.vmem_to_smem %s14_s26, 16, %s1420_s28, [#allocation3] }
   0xc   :  { %1412 = dma.done.wait [#allocation3], 16 }
   0xd   :  { %1413 = vsyncadd [#allocation3], 4294967280 }
   0xe   :  { %18 = sfence }
   0xf   :  { %19 = vsyncpa [#allocation6], 0 }
  0x10   :  { %20 = vsyncpa [#allocation7], 0 }
  0x11   :  { %21 = vsyncpa [#allocation10], 0  ;;  %s1421_s29 = smov [#allocation5]   ;;  %s1346_s9 = scalar_lea.hbm %s1707_s2, 512 }
  0x12   :  { %s29_s30 = sshll.u32 %s1421_s29, 4  ;;  %p1347_p5 = scmp.ne.s32.totalorder %s1707_s2, %s1346_s9  ;;  %s30_s30 = int_to_ptr.vmem [resolvable:$true] %s29_s30 }
  0x13   :  { %p1350_p6 = scmp.lt.u32.totalorder %s1346_s9, %s1707_s2 }
  0x15   :  { %p1352_p7 = pnand %p1350_p6, %p1347_p5 }
  0x17   :  { %1355 = shalt.err (!%p1352_p7)
}
  0x18   :  { %s1356_s14 = scalar_lea.vmem %s30_s30, 512  ;;  %p1361_p9 = scmp.lt.s32.totalorder %s30_s30, %s30_s30 }
  0x19   :  { %p1357_p8 = scmp.ne.s32.totalorder %s30_s30, %s1356_s14  ;;  %p1362_p10 = scmp.lt.s32.totalorder %s1356_s14, %s1356_s14 }
  0x1b   :  { %p1363_p11 = por %p1362_p10, %p1361_p9 }
  0x1d   :  { %p1364_p12 = pnand %p1363_p11, %p1357_p8 }
  0x1f   :  { %1367 = shalt.err (!%p1364_p12)
}
  0x20   :  { %s1422_s15 = smov 128   ;;  %s1423_s16 = smov 8  }
  0x21   :  { %35 = dma.hbm_to_vmem [thread:$0]  %s1707_s2, 512, %s30_s30, [#allocation6], %s1422_s15, %s1422_s15, %s1423_s16  }
  0x22   :  { %1414 = dma.done.wait [#allocation6], 512  }
  0x23   :  { %1415 = vsyncadd [#allocation6], 4294966784  ;;  %v1424_v0 = vmov 0.0|0.0   ;;  %vm1425_vm0 = vmmov 0   ;;  %v1426_v1 = vmov 0.0   ;;  %s43_s19 = sld [smem:[#allocation4]]  ;;  %v111_v14 = vlaneseq }
  0x24   :  { %1235 = vmatprep.subr.bf16.mxu0 %v1424_v0  ;;  %1144 = vmatprep.mubr.msk.f32.mxu0 %vm1425_vm0, %v1426_v1  ;;  %s1067_s20 = sld [smem:[#allocation4 + $0x1]]  ;;  %v107_v2 = vld [vmem:[#allocation5] sm:$0xff]  ;;  %v108_v3 = vld [vmem:[#allocation5 + $0x8] sm:$0xff]  ;;  %v109_v4 = vld [vmem:[#allocation5 + $0x10] sm:$0xff]  ;;  %s1427_s26 = smov 64   ;;  %vm217_vm4 = vcmask 254976  }
  0x25   :  { %1241 = vmatprep.subr.bf16.mxu1 %v1424_v0  ;;  %1155 = vmatprep.mubr.msk.f32.mxu1 %vm1425_vm0, %v1426_v1  ;;  %v1500_v5 = vpack.c.bf16 %v108_v3, %v107_v2  ;;  %v110_v6 = vld [vmem:[#allocation5 + $0x18] sm:$0xff]  ;;  %v112_v15 = vand.u32 127, %v111_v14  ;;  %s1428_s27 = smov 32   ;;  %s1068_s28 = sld [smem:[#allocation4 + $0x2]]  ;;  %vm117_vm5 = vcmask 261120   ;;  %v928_v18 = vld [vmem:[%s1708_s3 + $0x10] sm:$0xff] }
  0x26   :  { %v1503_v9 = vpack.c.bf16 %v110_v6, %v109_v4  ;;  %s1069_s29 = sld [smem:[#allocation4 + $0x3]]  ;;  %s1070_s12 = sld [smem:[#allocation4 + $0x4]] }
  0x27   :  { %1237 = vmatpush3.bf16.msra.mxu0 %v1500_v5  ;;  %1243 = vmatpush3.bf16.msra.mxu1 %v1500_v5  ;;  %vm113_vm1 = vcmp.ge.s32.totalorder %v112_v15, 64  ;;  %vm114_vm2 = vcmp.lt.s32.totalorder %v112_v15, 96  ;;  %s1071_s13 = sld [smem:[#allocation4 + $0x5]]  ;;  %s1073_s2 = sld [smem:[#allocation4 + $0x7]] }
  0x28   :  { %1238 = vmatprep.subr.bf16.mxu0 %v1424_v0  ;;  %1244 = vmatprep.subr.bf16.mxu1 %v1424_v0  ;;  %vm1519_vm3 = vmand %vm113_vm1, %vm114_vm2  ;;  %s1075_s30 = sld [smem:[#allocation4 + $0x9]]  ;;  %s1077_s14 = sld [smem:[#allocation4 + $0xb]] }
  0x29   :  { %s44_s22 = scalar_lea.vmem %s1706_s1, %s43_s19  ;;  %s1079_s21 = sld [smem:[#allocation4 + $0xd]] }
  0x2a   :  { %s48_s25 = scalar_lea.vmem %s1706_s1, %s1067_s20  ;;  %v45_v7 = vld [vmem:[%s44_s22] sm:$0x1]  ;;  %s1072_s20 = sld [smem:[#allocation4 + $0x6]] }
  0x2b   :  { %v49_v8 = vld [vmem:[%s48_s25] sm:$0x1]  ;;  %46 = vst [vmem:[#allocation2] sm:$0x1] %v45_v7  ;;  %1240 = vmatpush3.bf16.msra.mxu0 %v1503_v9  ;;  %1246 = vmatpush3.bf16.msra.mxu1 %v1503_v9  ;;  %s52_s8 = scalar_lea.vmem %s1706_s1, %s1068_s28  ;;  %s1081_s0 = sld [smem:[#allocation4 + $0xf]] }
  0x2c   :  { %50 = vst [vmem:[#allocation2 + $0x1] sm:$0x1] %v49_v8  ;;  %1247 = vmatprep.subr.bf16.mxu0 %v1424_v0  ;;  %1253 = vmatprep.subr.bf16.mxu1 %v1424_v0  ;;  %s56_s11 = scalar_lea.vmem %s1706_s1, %s1069_s29  ;;  %v53_v27 = vld [vmem:[%s52_s8] sm:$0x1]  ;;  %s60_s16 = scalar_lea.vmem %s1706_s1, %s1070_s12 }
  0x2d   :  { %v57_v28 = vld [vmem:[%s56_s11] sm:$0x1]  ;;  %54 = vst [vmem:[#allocation2 + $0x2] sm:$0x1] %v53_v27  ;;  %s64_s19 = scalar_lea.vmem %s1706_s1, %s1071_s13  ;;  %s72_s28 = scalar_lea.vmem %s1706_s1, %s1073_s2 }
  0x2e   :  { %1145 = vmatmul.mubr.f32.vlgmr.msra.gmra.mrb[0].mxu0 %v1426_v1  ;;  %58 = vst [vmem:[#allocation2 + $0x3] sm:$0x1] %v57_v28  ;;  %v61_v46 = vld [vmem:[%s60_s16] sm:$0x1]  ;;  %s1074_s29 = sld [smem:[#allocation4 + $0x8]]  ;;  %s80_s12 = scalar_lea.vmem %s1706_s1, %s1075_s30 }
  0x2f   :  { %1249 = vmatpush3.bf16.msra.mxu0 %v1500_v5  ;;  %1166 = vmatprep.mubr.msk.f32.mxu0 %vm1425_vm0, %v1426_v1  ;;  %v65_v47 = vld [vmem:[%s64_s19] sm:$0x1]  ;;  %62 = vst [vmem:[#allocation2 + $0x4] sm:$0x1] %v61_v46  ;;  %s1076_s13 = sld [smem:[#allocation4 + $0xa]]  ;;  %s1078_s2 = sld [smem:[#allocation4 + $0xc]] }
  0x30   :  { %1250 = vmatprep.subr.bf16.mxu0 %v1424_v0  ;;  %66 = vst [vmem:[#allocation2 + $0x5] sm:$0x1] %v65_v47  ;;  %s68_s23 = scalar_lea.vmem %s1706_s1, %s1072_s20  ;;  %v73_v4 = vld [vmem:[%s72_s28] sm:$0x1]  ;;  %s88_s20 = scalar_lea.vmem %s1706_s1, %s1077_s14 }
  0x31   :  { %v69_v3 = vld [vmem:[%s68_s23] sm:$0x1]  ;;  %74 = vst [vmem:[#allocation2 + $0x7] sm:$0x1] %v73_v4  ;;  %s1080_s30 = sld [smem:[#allocation4 + $0xe]] }
  0x32   :  { %70 = vst [vmem:[#allocation2 + $0x6] sm:$0x1] %v69_v3 }
  0x33   :  { %1252 = vmatpush3.bf16.msra.mxu0 %v1503_v9  ;;  %v116_v10 = vld [vmem:[#allocation2] sm:$0x3] }
  0x34   :  { %1259 = vmatprep.subr.bf16.mxu0 %v1424_v0  ;;  %s76_s9 = scalar_lea.vmem %s1706_s1, %s1074_s29  ;;  %s96_s29 = scalar_lea.vmem %s1706_s1, %s1079_s21 }
  0x35   :  { %v219_v32 = vld [vmem:[#allocation2 + $0x2] sm:$0x3]  ;;  %s84_s17 = scalar_lea.vmem %s1706_s1, %s1076_s13  ;;  %s92_s24 = scalar_lea.vmem %s1706_s1, %s1078_s2 }
  0x36   :  { %s104_s13 = scalar_lea.vmem %s1706_s1, %s1081_s0  ;;  %s1429_s2 = smov [#allocation8]  }
  0x37   :  { %v320_v51 = vld [vmem:[#allocation2 + $0x4] sm:$0x3]  ;;  %s100_s10 = scalar_lea.vmem %s1706_s1, %s1080_s30  ;;  %s1021_s21 = sshll.u32 %s1429_s2, 4  ;;  %s1022_s21 = int_to_ptr.vmem [resolvable:$true] %s1021_s21 }
  0x38   :  { %p1373_p0 = scmp.lt.s32.totalorder %s1022_s21, %s1022_s21 }
 0x101   :  { %v187_v11 = vpop.f32.mrb[0].mxu0 }
 0x102   :  { %v191_v12 = vadd.f32 %v187_v11, %v116_v10  ;;  %v1146_v13 = vpop.f32.mrb[1].mxu0  ;;  %v421_v10 = vld [vmem:[#allocation2 + $0x6] sm:$0x3] }
 0x104   :  { %1302 = vtanh.f32 %v191_v12 }
 0x10e   :  { %v1303_v16 = vpop.eup %1302 }
 0x10f   :  { %v193_v17 = vmul.f32 0.5, %v1303_v16 }
 0x111   :  { %v194_v19 = vadd.f32 0.5, %v193_v17 }
 0x113   :  { %v195_v20 = vsel %vm1519_vm3, %v1303_v16, %v194_v19 }
 0x114   :  { %198 = vrot.lane.b32.xlu0 %v195_v20, %s1427_s26  ;;  %v196_v23 = vmul.f32 0.0, %v195_v20 }
 0x186   :  { %v199_v21 = vpop.permute.xlu0 %198 }
 0x187   :  { %v201_v22 = vmul.f32 %v199_v21, %v195_v20 }
 0x189   :  { %203 = vrot.lane.b32.xlu0 %v201_v22, %s1428_s27 }
 0x1fb   :  { %v204_v24 = vpop.permute.xlu0 %203 }
 0x1fc   :  { %v206_v25 = vadd.f32 %v204_v24, %v196_v23 }
 0x1fe   :  { %1304 = vtanh.f32 %v206_v25 }
 0x208   :  { %v1305_v26 = vpop.eup %1304 }
 0x209   :  { %209 = vrot.lane.b32.xlu1 %v1305_v26, %s1427_s26  ;;  %v81_v26 = vld [vmem:[%s80_s12] sm:$0x1] }
 0x20a   :  { %82 = vst [vmem:[#allocation2 + $0x9] sm:$0x1] %v81_v26 }
 0x27b   :  { %v210_v29 = vpop.permute.xlu1 %209 }
 0x27c   :  { %v212_v30 = vmul.f32 %v210_v29, %v195_v20 }
 0x27e   :  { %214 = vrot.lane.b32.xlu1 %v212_v30, %s1428_s27 }
 0x2f0   :  { %v215_v31 = vpop.permute.xlu1 %214 }
 0x2f1   :  { %218 = vst.msk [vmem:[#allocation8] sm:$0x3] %vm217_vm4, %v215_v31  ;;  %1156 = vmatmul.mubr.msk.f32.vlgmr.msra.gmra.mrb[0].mxu1 %vm117_vm5, %v215_v31 }
 0x2f2   :  { %1255 = vmatpush3.bf16.msra.mxu1 %v1500_v5  ;;  %1177 = vmatprep.mubr.msk.f32.mxu1 %vm1425_vm0, %v1426_v1 }
 0x2f3   :  { %1256 = vmatprep.subr.bf16.mxu1 %v1424_v0 }
 0x2f6   :  { %1258 = vmatpush3.bf16.msra.mxu1 %v1503_v9 }
 0x2f7   :  { %1265 = vmatprep.subr.bf16.mxu1 %v1424_v0 }
 0x3c4   :  { %v288_v33 = vpop.f32.mrb[0].mxu1 }
 0x3c5   :  { %v292_v34 = vadd.f32 %v288_v33, %v219_v32  ;;  %v1157_v35 = vpop.f32.mrb[1].mxu1 }
 0x3c7   :  { %1306 = vtanh.f32 %v292_v34 }
 0x3d1   :  { %v1307_v36 = vpop.eup %1306 }
 0x3d2   :  { %v294_v37 = vmul.f32 0.5, %v1307_v36 }
 0x3d4   :  { %v295_v38 = vadd.f32 0.5, %v294_v37 }
 0x3d6   :  { %v296_v39 = vsel %vm1519_vm3, %v1307_v36, %v295_v38 }
 0x3d7   :  { %299 = vrot.lane.b32.xlu0 %v296_v39, %s1427_s26  ;;  %v297_v42 = vmul.f32 %v296_v39, %v206_v25  ;;  %v77_v25 = vld [vmem:[%s76_s9] sm:$0x1] }
 0x3d8   :  { %78 = vst [vmem:[#allocation2 + $0x8] sm:$0x1] %v77_v25 }
 0x3df   :  { %v522_v30 = vld [vmem:[#allocation2 + $0x8] sm:$0x3] }
 0x449   :  { %v300_v40 = vpop.permute.xlu0 %299 }
 0x44a   :  { %v302_v41 = vmul.f32 %v300_v40, %v296_v39 }
 0x44c   :  { %304 = vrot.lane.b32.xlu1 %v302_v41, %s1428_s27 }
 0x4be   :  { %v305_v43 = vpop.permute.xlu1 %304 }
 0x4bf   :  { %v307_v44 = vadd.f32 %v305_v43, %v297_v42 }
 0x4c1   :  { %1308 = vtanh.f32 %v307_v44 }
 0x4cb   :  { %v1309_v45 = vpop.eup %1308 }
 0x4cc   :  { %310 = vrot.lane.b32.xlu0 %v1309_v45, %s1427_s26  ;;  %v89_v45 = vld [vmem:[%s88_s20] sm:$0x1] }
 0x4cd   :  { %90 = vst [vmem:[#allocation2 + $0xb] sm:$0x1] %v89_v45 }
 0x53e   :  { %v311_v48 = vpop.permute.xlu0 %310 }
 0x53f   :  { %v313_v49 = vmul.f32 %v311_v48, %v296_v39 }
 0x541   :  { %315 = vrot.lane.b32.xlu1 %v313_v49, %s1428_s27 }
 0x5b3   :  { %v316_v50 = vpop.permute.xlu1 %315 }
 0x5b4   :  { %319 = vst.msk [vmem:[#allocation8 + $0x2] sm:$0x3] %vm217_vm4, %v316_v50  ;;  %1167 = vmatmul.mubr.msk.f32.vlgmr.msra.gmra.mrb[2].mxu0 %vm117_vm5, %v316_v50 }
 0x5b5   :  { %1261 = vmatpush3.bf16.msra.mxu0 %v1500_v5  ;;  %1188 = vmatprep.mubr.msk.f32.mxu0 %vm1425_vm0, %v1426_v1 }
 0x5b6   :  { %1262 = vmatprep.subr.bf16.mxu0 %v1424_v0 }
 0x5b9   :  { %1264 = vmatpush3.bf16.msra.mxu0 %v1503_v9 }
 0x5ba   :  { %1271 = vmatprep.subr.bf16.mxu0 %v1424_v0 }
 0x687   :  { %v389_v52 = vpop.f32.mrb[2].mxu0 }
 0x688   :  { %v393_v53 = vadd.f32 %v389_v52, %v320_v51  ;;  %v1168_v54 = vpop.f32.mrb[3].mxu0 }
 0x68a   :  { %1310 = vtanh.f32 %v393_v53 }
 0x694   :  { %v1311_v55 = vpop.eup %1310 }
 0x695   :  { %v395_v56 = vmul.f32 0.5, %v1311_v55 }
 0x697   :  { %v396_v57 = vadd.f32 0.5, %v395_v56 }
 0x699   :  { %v397_v58 = vsel %vm1519_vm3, %v1311_v55, %v396_v57 }
 0x69a   :  { %400 = vrot.lane.b32.xlu0 %v397_v58, %s1427_s26  ;;  %v398_v61 = vmul.f32 %v397_v58, %v307_v44  ;;  %v85_v44 = vld [vmem:[%s84_s17] sm:$0x1] }
 0x69b   :  { %86 = vst [vmem:[#allocation2 + $0xa] sm:$0x1] %v85_v44 }
 0x6a2   :  { %v623_v49 = vld [vmem:[#allocation2 + $0xa] sm:$0x3] }
 0x70c   :  { %v401_v59 = vpop.permute.xlu0 %400 }
 0x70d   :  { %v403_v60 = vmul.f32 %v401_v59, %v397_v58 }
 0x70f   :  { %405 = vrot.lane.b32.xlu1 %v403_v60, %s1428_s27 }
 0x781   :  { %v406_v62 = vpop.permute.xlu1 %405 }
 0x782   :  { %v408_v63 = vadd.f32 %v406_v62, %v398_v61  ;;  %v93_v61 = vld [vmem:[%s92_s24] sm:$0x1] }
 0x783   :  { %v97_v62 = vld [vmem:[%s96_s29] sm:$0x1]  ;;  %94 = vst [vmem:[#allocation2 + $0xc] sm:$0x1] %v93_v61 }
 0x784   :  { %1312 = vtanh.f32 %v408_v63  ;;  %98 = vst [vmem:[#allocation2 + $0xd] sm:$0x1] %v97_v62 }
 0x78b   :  { %v724_v4 = vld [vmem:[#allocation2 + $0xc] sm:$0x3] }
 0x78e   :  { %v1313_v2 = vpop.eup %1312 }
 0x78f   :  { %411 = vrot.lane.b32.xlu0 %v1313_v2, %s1427_s26 }
 0x801   :  { %v412_v6 = vpop.permute.xlu0 %411 }
 0x802   :  { %v414_v7 = vmul.f32 %v412_v6, %v397_v58 }
 0x804   :  { %416 = vrot.lane.b32.xlu1 %v414_v7, %s1428_s27 }
 0x876   :  { %v417_v8 = vpop.permute.xlu1 %416 }
 0x877   :  { %420 = vst.msk [vmem:[#allocation8 + $0x4] sm:$0x3] %vm217_vm4, %v417_v8  ;;  %1178 = vmatmul.mubr.msk.f32.vlgmr.msra.gmra.mrb[2].mxu1 %vm117_vm5, %v417_v8 }
 0x878   :  { %1267 = vmatpush3.bf16.msra.mxu1 %v1500_v5  ;;  %1199 = vmatprep.mubr.msk.f32.mxu1 %vm1425_vm0, %v1426_v1 }
 0x879   :  { %1268 = vmatprep.subr.bf16.mxu1 %v1424_v0 }
 0x87c   :  { %1270 = vmatpush3.bf16.msra.mxu1 %v1503_v9 }
 0x87d   :  { %1277 = vmatprep.subr.bf16.mxu1 %v1424_v0 }
 0x94a   :  { %v490_v11 = vpop.f32.mrb[2].mxu1 }
 0x94b   :  { %v494_v12 = vadd.f32 %v490_v11, %v421_v10  ;;  %v1179_v13 = vpop.f32.mrb[3].mxu1 }
 0x94d   :  { %1314 = vtanh.f32 %v494_v12 }
 0x957   :  { %v1315_v14 = vpop.eup %1314 }
 0x958   :  { %v496_v15 = vmul.f32 0.5, %v1315_v14 }
 0x95a   :  { %v497_v16 = vadd.f32 0.5, %v496_v15 }
 0x95c   :  { %v498_v17 = vsel %vm1519_vm3, %v1315_v14, %v497_v16 }
 0x95d   :  { %501 = vrot.lane.b32.xlu0 %v498_v17, %s1427_s26  ;;  %v499_v21 = vmul.f32 %v498_v17, %v408_v63 }
 0x9cf   :  { %v502_v19 = vpop.permute.xlu0 %501 }
 0x9d0   :  { %v504_v20 = vmul.f32 %v502_v19, %v498_v17 }
 0x9d2   :  { %506 = vrot.lane.b32.xlu1 %v504_v20, %s1428_s27  ;;  %v101_v20 = vld [vmem:[%s100_s10] sm:$0x1] }
 0x9d3   :  { %102 = vst [vmem:[#allocation2 + $0xe] sm:$0x1] %v101_v20 }
 0xa44   :  { %v507_v22 = vpop.permute.xlu1 %506 }
 0xa45   :  { %v509_v23 = vadd.f32 %v507_v22, %v499_v21  ;;  %v105_v21 = vld [vmem:[%s104_s13] sm:$0x1] }
 0xa46   :  { %106 = vst [vmem:[#allocation2 + $0xf] sm:$0x1] %v105_v21 }
 0xa47   :  { %1316 = vtanh.f32 %v509_v23 }
 0xa4d   :  { %v825_v25 = vld [vmem:[#allocation2 + $0xe] sm:$0x3] }
 0xa51   :  { %v1317_v24 = vpop.eup %1316 }
 0xa52   :  { %512 = vrot.lane.b32.xlu0 %v1317_v24, %s1427_s26 }
 0xac4   :  { %v513_v27 = vpop.permute.xlu0 %512 }
 0xac5   :  { %v515_v28 = vmul.f32 %v513_v27, %v498_v17 }
 0xac7   :  { %517 = vrot.lane.b32.xlu1 %v515_v28, %s1428_s27 }
 0xb39   :  { %v518_v29 = vpop.permute.xlu1 %517 }
 0xb3a   :  { %521 = vst.msk [vmem:[#allocation8 + $0x6] sm:$0x3] %vm217_vm4, %v518_v29  ;;  %1189 = vmatmul.mubr.msk.f32.vlgmr.msra.gmra.mrb[4].mxu0 %vm117_vm5, %v518_v29 }
 0xb3b   :  { %1273 = vmatpush3.bf16.msra.mxu0 %v1500_v5  ;;  %1210 = vmatprep.mubr.msk.f32.mxu0 %vm1425_vm0, %v1426_v1 }
 0xb3c   :  { %1274 = vmatprep.subr.bf16.mxu0 %v1424_v0 }
 0xb3f   :  { %1276 = vmatpush3.bf16.msra.mxu0 %v1503_v9 }
 0xb40   :  { %1283 = vmatprep.subr.bf16.mxu0 %v1424_v0 }
 0xc0d   :  { %v591_v31 = vpop.f32.mrb[4].mxu0 }
 0xc0e   :  { %v595_v32 = vadd.f32 %v591_v31, %v522_v30  ;;  %v1190_v33 = vpop.f32.mrb[5].mxu0 }
 0xc10   :  { %1318 = vtanh.f32 %v595_v32 }
 0xc1a   :  { %v1319_v34 = vpop.eup %1318 }
 0xc1b   :  { %v597_v35 = vmul.f32 0.5, %v1319_v34 }
 0xc1d   :  { %v598_v36 = vadd.f32 0.5, %v597_v35 }
 0xc1f   :  { %v599_v37 = vsel %vm1519_vm3, %v1319_v34, %v598_v36 }
 0xc20   :  { %602 = vrot.lane.b32.xlu0 %v599_v37, %s1427_s26  ;;  %v600_v40 = vmul.f32 %v599_v37, %v509_v23 }
 0xc92   :  { %v603_v38 = vpop.permute.xlu0 %602 }
 0xc93   :  { %v605_v39 = vmul.f32 %v603_v38, %v599_v37  ;;  %v926_v38 = vld [vmem:[%s1708_s3] sm:$0xff] }
 0xc95   :  { %607 = vrot.lane.b32.xlu1 %v605_v39, %s1428_s27  ;;  %v927_v39 = vld [vmem:[%s1708_s3 + $0x8] sm:$0xff] }
 0xd07   :  { %v608_v41 = vpop.permute.xlu1 %607 }
 0xd08   :  { %v610_v42 = vadd.f32 %v608_v41, %v600_v40  ;;  %v1284_v40 = vpack.c.bf16 %v927_v39, %v926_v38  ;;  %v929_v41 = vld [vmem:[%s1708_s3 + $0x18] sm:$0xff]  ;;  %s1368_s3 = scalar_lea.vmem %s1022_s21, 256 }
 0xd09   :  { %p1369_p13 = scmp.ne.s32.totalorder %s1022_s21, %s1368_s3  ;;  %p1374_p1 = scmp.lt.s32.totalorder %s1368_s3, %s1368_s3 }
 0xd0a   :  { %1320 = vtanh.f32 %v610_v42 }
 0xd0b   :  { %p1375_p2 = por %p1374_p1, %p1373_p0 }
 0xd0d   :  { %p1376_p3 = pnand %p1375_p2, %p1369_p13 }
 0xd14   :  { %v1321_v43 = vpop.eup %1320 }
 0xd15   :  { %613 = vrot.lane.b32.xlu0 %v1321_v43, %s1427_s26 }
 0xd87   :  { %v614_v46 = vpop.permute.xlu0 %613 }
 0xd88   :  { %v616_v47 = vmul.f32 %v614_v46, %v599_v37 }
 0xd8a   :  { %618 = vrot.lane.b32.xlu1 %v616_v47, %s1428_s27 }
 0xdfc   :  { %v619_v48 = vpop.permute.xlu1 %618 }
 0xdfd   :  { %622 = vst.msk [vmem:[#allocation8 + $0x8] sm:$0x3] %vm217_vm4, %v619_v48  ;;  %1200 = vmatmul.mubr.msk.f32.vlgmr.msra.gmra.mrb[4].mxu1 %vm117_vm5, %v619_v48 }
 0xdfe   :  { %1279 = vmatpush3.bf16.msra.mxu1 %v1500_v5  ;;  %1221 = vmatprep.mubr.msk.f32.mxu1 %vm1425_vm0, %v1426_v1 }
 0xdff   :  { %1280 = vmatprep.subr.bf16.mxu1 %v1424_v0 }
 0xe02   :  { %1282 = vmatpush3.bf16.msra.mxu1 %v1503_v9 }
 0xed0   :  { %v692_v50 = vpop.f32.mrb[4].mxu1 }
 0xed1   :  { %v696_v51 = vadd.f32 %v692_v50, %v623_v49  ;;  %v1201_v52 = vpop.f32.mrb[5].mxu1 }
 0xed3   :  { %1322 = vtanh.f32 %v696_v51 }
 0xedd   :  { %v1323_v53 = vpop.eup %1322 }
 0xede   :  { %v698_v54 = vmul.f32 0.5, %v1323_v53 }
 0xee0   :  { %v699_v55 = vadd.f32 0.5, %v698_v54 }
 0xee2   :  { %v700_v56 = vsel %vm1519_vm3, %v1323_v53, %v699_v55 }
 0xee3   :  { %703 = vrot.lane.b32.xlu0 %v700_v56, %s1427_s26  ;;  %v701_v58 = vmul.f32 %v700_v56, %v610_v42  ;;  %v1287_v42 = vpack.c.bf16 %v929_v41, %v928_v18 }
 0xf55   :  { %v704_v5 = vpop.permute.xlu0 %703 }
 0xf56   :  { %v706_v57 = vmul.f32 %v704_v5, %v700_v56 }
 0xf58   :  { %708 = vrot.lane.b32.xlu1 %v706_v57, %s1428_s27 }
 0xfca   :  { %v709_v59 = vpop.permute.xlu1 %708 }
 0xfcb   :  { %v711_v9 = vadd.f32 %v709_v59, %v701_v58 }
 0xfcd   :  { %1324 = vtanh.f32 %v711_v9 }
 0xfd7   :  { %v1325_v60 = vpop.eup %1324 }
 0xfd8   :  { %714 = vrot.lane.b32.xlu0 %v1325_v60, %s1427_s26 }
0x104a   :  { %v715_v63 = vpop.permute.xlu0 %714 }
0x104b   :  { %v717_v2 = vmul.f32 %v715_v63, %v700_v56 }
0x104d   :  { %719 = vrot.lane.b32.xlu1 %v717_v2, %s1428_s27 }
0x10bf   :  { %v720_v3 = vpop.permute.xlu1 %719 }
0x10c0   :  { %723 = vst.msk [vmem:[#allocation8 + $0xa] sm:$0x3] %vm217_vm4, %v720_v3  ;;  %1211 = vmatmul.mubr.msk.f32.vlgmr.msra.gmra.mrb[6].mxu0 %vm117_vm5, %v720_v3 }
0x10c1   :  { %1232 = vmatprep.mubr.msk.f32.mxu0 %vm1425_vm0, %v1426_v1  ;;  %1285 = vmatpush3.bf16.msra.mxu0 %v1284_v40 }
0x10c2   :  { %1286 = vmatprep.subr.bf16.mxu0 %v1424_v0 }
0x10c5   :  { %1288 = vmatpush3.bf16.msra.mxu0 %v1287_v42 }
0x1193   :  { %v793_v6 = vpop.f32.mrb[6].mxu0 }
0x1194   :  { %v797_v7 = vadd.f32 %v793_v6, %v724_v4  ;;  %v1212_v8 = vpop.f32.mrb[7].mxu0 }
0x1196   :  { %1326 = vtanh.f32 %v797_v7 }
0x11a0   :  { %v1327_v10 = vpop.eup %1326 }
0x11a1   :  { %v799_v11 = vmul.f32 0.5, %v1327_v10 }
0x11a3   :  { %v800_v12 = vadd.f32 0.5, %v799_v11 }
0x11a5   :  { %v801_v13 = vsel %vm1519_vm3, %v1327_v10, %v800_v12 }
0x11a6   :  { %804 = vrot.lane.b32.xlu0 %v801_v13, %s1427_s26  ;;  %v802_v16 = vmul.f32 %v801_v13, %v711_v9 }
0x1218   :  { %v805_v14 = vpop.permute.xlu0 %804 }
0x1219   :  { %v807_v15 = vmul.f32 %v805_v14, %v801_v13 }
0x121b   :  { %809 = vrot.lane.b32.xlu1 %v807_v15, %s1428_s27 }
0x128d   :  { %v810_v17 = vpop.permute.xlu1 %809 }
0x128e   :  { %v812_v1 = vadd.f32 %v810_v17, %v802_v16 }
0x1290   :  { %1328 = vtanh.f32 %v812_v1 }
0x129a   :  { %v1329_v19 = vpop.eup %1328 }
0x129b   :  { %815 = vrot.lane.b32.xlu0 %v1329_v19, %s1427_s26 }
0x130d   :  { %v816_v22 = vpop.permute.xlu0 %815 }
0x130e   :  { %v818_v23 = vmul.f32 %v816_v22, %v801_v13 }
0x1310   :  { %820 = vrot.lane.b32.xlu1 %v818_v23, %s1428_s27 }
0x1382   :  { %v821_v24 = vpop.permute.xlu1 %820 }
0x1383   :  { %824 = vst.msk [vmem:[#allocation8 + $0xc] sm:$0x3] %vm217_vm4, %v821_v24  ;;  %1222 = vmatmul.mubr.msk.f32.vlgmr.msra.gmra.mrb[6].mxu1 %vm117_vm5, %v821_v24 }
0x1456   :  { %v894_v26 = vpop.f32.mrb[6].mxu1 }
0x1457   :  { %v898_v27 = vadd.f32 %v894_v26, %v825_v25  ;;  %v1223_v28 = vpop.f32.mrb[7].mxu1 }
0x1459   :  { %1330 = vtanh.f32 %v898_v27 }
0x1463   :  { %v1331_v29 = vpop.eup %1330 }
0x1464   :  { %v900_v30 = vmul.f32 0.5, %v1331_v29 }
0x1466   :  { %v901_v31 = vadd.f32 0.5, %v900_v30 }
0x1468   :  { %v902_v32 = vsel %vm1519_vm3, %v1331_v29, %v901_v31 }
0x1469   :  { %905 = vrot.lane.b32.xlu0 %v902_v32, %s1427_s26  ;;  %v903_v35 = vmul.f32 %v902_v32, %v812_v1 }
0x14db   :  { %v906_v33 = vpop.permute.xlu0 %905 }
0x14dc   :  { %v908_v34 = vmul.f32 %v906_v33, %v902_v32 }
0x14de   :  { %910 = vrot.lane.b32.xlu1 %v908_v34, %s1428_s27 }
0x1550   :  { %v911_v36 = vpop.permute.xlu1 %910 }
0x1551   :  { %v913_v37 = vadd.f32 %v911_v36, %v903_v35 }
0x1553   :  { %1332 = vtanh.f32 %v913_v37 }
0x155d   :  { %v1333_v43 = vpop.eup %1332 }
0x155e   :  { %916 = vrot.lane.b32.xlu0 %v1333_v43, %s1427_s26 }
0x15d0   :  { %v917_v44 = vpop.permute.xlu0 %916 }
0x15d1   :  { %v919_v45 = vmul.f32 %v917_v44, %v902_v32 }
0x15d3   :  { %921 = vrot.lane.b32.xlu1 %v919_v45, %s1428_s27 }
0x1645   :  { %v922_v46 = vpop.permute.xlu1 %921 }
0x1646   :  { %925 = vst.msk [vmem:[#allocation8 + $0xe] sm:$0x3] %vm217_vm4, %v922_v46  ;;  %1233 = vmatmul.mubr.msk.f32.vlgmr.msra.gmra.mrb[8].mxu0 %vm117_vm5, %v922_v46 }
0x1647   :  { %1379 = shalt.err (!%p1376_p3)
}
0x1648   :  { %s1380_s23 = scalar_lea.hbm %s1710_s5, 256 }
0x1649   :  { %p1381_p4 = scmp.ne.s32.totalorder %s1710_s5, %s1380_s23  ;;  %p1384_p5 = scmp.lt.u32.totalorder %s1380_s23, %s1710_s5 }
0x164b   :  { %p1386_p6 = pnand %p1384_p5, %p1381_p4 }
0x164d   :  { %1389 = shalt.err (!%p1386_p6)
}
0x164e   :  { %s1430_s30 = smov 2   ;;  %v1089_v0 = vld [vmem:[%s1709_s4] ss:$0 sm:$0xff]  ;;  %vm1009_vm6 = vcmask 58368   ;;  %s1431_s11 = smov 120  }
0x164f   :  { %1027 = dma.vmem_to_hbm [thread:$0]  %s1022_s21, 256, %s1710_s5, [#allocation7], %s1428_s27, %s1428_s27, %s1430_s30  }
0x1650   :  { %s1432_s1 = smov [#allocation9]  }
0x1651   :  { %s1036_s14 = sshll.u32 %s1432_s1, 4  ;;  %s1037_s14 = int_to_ptr.vmem [resolvable:$true] %s1036_s14 }
0x1652   :  { %s1390_s5 = scalar_lea.vmem %s1037_s14, 32  ;;  %p1395_p8 = scmp.lt.s32.totalorder %s1037_s14, %s1037_s14 }
0x1653   :  { %p1391_p7 = scmp.ne.s32.totalorder %s1037_s14, %s1390_s5  ;;  %p1396_p9 = scmp.lt.s32.totalorder %s1390_s5, %s1390_s5 }
0x1655   :  { %p1397_p10 = por %p1396_p9, %p1395_p8 }
0x1657   :  { %p1398_p11 = pnand %p1397_p10, %p1391_p7 }
0x1719   :  { %v1005_v47 = vpop.f32.mrb[8].mxu0 }
0x171a   :  { %v1006_v48 = vadd.f32 %v1089_v0, %v1005_v47  ;;  %v1234_v49 = vpop.f32.mrb[9].mxu0 }
0x171c   :  { %1012 = vrot.lane.b32.xlu0 %v1006_v48, %s1431_s11  ;;  %1010 = vst.msk [vmem:[%s1711_s6] sm:$0x3] %vm1009_vm6, %v1006_v48 }
0x178e   :  { %v1013_v50 = vpop.permute.xlu0 %1012 }
0x178f   :  { %1015 = vst.msk [vmem:[#allocation9] sm:$0x3] %vm1009_vm6, %v1013_v50 }
0x1790   :  { %1401 = shalt.err (!%p1398_p11)
}
0x1791   :  { %s1402_s15 = scalar_lea.hbm %s1712_s7, 32 }
0x1792   :  { %p1403_p12 = scmp.ne.s32.totalorder %s1712_s7, %s1402_s15  ;;  %p1406_p13 = scmp.lt.u32.totalorder %s1402_s15, %s1712_s7 }
0x1794   :  { %p1408_p0 = pnand %p1406_p13, %p1403_p12 }
0x1796   :  { %1411 = shalt.err (!%p1408_p0)
}
0x1797   :  { %1039 = dma.vmem_to_hbm [thread:$0]  %s1037_s14, 32, %s1712_s7, [#allocation10]  }
0x1798   :  { %1416 = dma.done.wait [#allocation7], 256  }
0x1799   :  { %1417 = vsyncadd [#allocation7], 4294967040 }
0x179a   :  { %1418 = dma.done.wait [#allocation10], 32  }
0x179b   :  { %1419 = vsyncadd [#allocation10], 4294967264 }
0x179c   :  { %1048 = vsyncpa [#allocation6], 1 }
0x179d   :  { %1049 = vsyncpa [#allocation7], 1 }
0x179e   :  { %1050 = vsyncpa [#allocation10], 1 }

</bundles_post_ra>
